<compile_context>
chip_gen: v7x
topology: tpu7x:2x2x1
jax: 0.10.0
libtpu: 0.0.40
codegen_flags: <defaults>
</compile_context>

<pallas_src>
import jax
import jax.numpy as jnp
from jax.experimental import pallas as pl
from jax.experimental.pallas import tpu as pltpu


def _make_conv_kernel(NB, KH, KW, Ho, Wo):
    """Direct conv (valid padding, stride 1) over a sub-batch of NB images."""
    S = Ho * Wo

    def conv_kernel(x_ref, w_ref, b_ref, o_ref):
        # x_ref : (NB, Cin, H, W)     VMEM  (NCHW, no wrapper transpose)
        # w_ref : (Cout, KH*KW*Cin)   VMEM  (row p = (kh*KW + kw)*Cin + cin)
        # b_ref : (Cout, 1)           VMEM
        # o_ref : (NB, Cout, Ho*Wo)   VMEM  (lane-dense: last dim = Ho*Wo)
        w_flat = w_ref[...]            # (Cout, P)
        bias = b_ref[...]              # (Cout, 1)
        Cin = x_ref.shape[1]

        # NB is tiny (N split over at most 2 grid steps); fully unrolled.
        for n in range(NB):
            xn = x_ref[n]              # (Cin, H, W)
            # im2col: build the (P, S) patch matrix once, then ONE contraction.
            pieces = []
            for kh in range(KH):
                for kw in range(KW):
                    pieces.append(xn[:, kh:kh + Ho, kw:kw + Wo].reshape(Cin, S))
            patches = jnp.concatenate(pieces, axis=0)        # (P, S) = (27, 196)
            acc = jnp.dot(w_flat, patches,
                          preferred_element_type=jnp.float32)  # (Cout, S)
            # Bias broadcast over the spatial (lane) axis; lane-dense store.
            o_ref[n] = (acc + bias).astype(o_ref.dtype)

    return conv_kernel


def conv2d_pallas(x_nchw, w_oihw, bias):
    """Conv2d, stride=1, padding=0 (valid), matching torch.nn.Conv2d semantics.

    x_nchw : (N, Cin, H, W)      float32
    w_oihw : (Cout, Cin, KH, KW) float32
    bias   : (Cout,)             float32
    returns: (N, Cout, Ho, Wo)   float32
    """
    N, Cin, H, W = x_nchw.shape
    Cout, Cin_w, KH, KW = w_oihw.shape
    assert Cin == Cin_w
    Ho, Wo = H - KH + 1, W - KW + 1

    # Only the tiny weight tensor (Cout*Cin*KH*KW = 162 elems) gets a layout fixup;
    # activations are NOT transposed in the wrapper.
    w_flat = jnp.transpose(w_oihw, (0, 2, 3, 1)).reshape(Cout, KH * KW * Cin)
    b2d = bias.reshape(Cout, 1)

    # Split the batch across at most 2 grid steps (one per v7x TensorCore);
    # each step processes a whole sub-batch of NB images in one block.
    G = 2 if (N >= 2 and N % 2 == 0) else 1
    NB = N // G

    kernel = _make_conv_kernel(NB, KH, KW, Ho, Wo)

    out_flat = pl.pallas_call(
        kernel,
        out_shape=jax.ShapeDtypeStruct((N, Cout, Ho * Wo), x_nchw.dtype),
        grid_spec=pltpu.PrefetchScalarGridSpec(
            num_scalar_prefetch=0,
            grid=(G,),
            in_specs=[
                pl.BlockSpec((NB, Cin, H, W), lambda g: (g, 0, 0, 0)),
                pl.BlockSpec((Cout, KH * KW * Cin), lambda g: (0, 0)),
                pl.BlockSpec((Cout, 1), lambda g: (0, 0)),
            ],
            out_specs=pl.BlockSpec((NB, Cout, Ho * Wo), lambda g: (g, 0, 0)),
        ),
        compiler_params=pltpu.CompilerParams(
            dimension_semantics=("parallel",),
        ),
    )(x_nchw, w_flat, b2d)

    # Kernel already emits NCHW ordering: this reshape is free (no transpose).
    return out_flat.reshape(N, Cout, Ho, Wo)


if __name__ == "__main__":
    key = jax.random.PRNGKey(0)
    k_x, k_w, k_b = jax.random.split(key, 3)

    # Module-implied shapes: Conv2d(3 -> 6, kernel 3x3). Small example input.
    N, Cin, H, W = 2, 3, 16, 16
    Cout, KH, KW = 6, 3, 3

    x = jax.random.normal(k_x, (N, Cin, H, W), dtype=jnp.float32)

    # Deterministic parameter init (PyTorch-style uniform bound 1/sqrt(fan_in)).
    fan_in = Cin * KH * KW
    bound = 1.0 / (fan_in ** 0.5)
    w = jax.random.uniform(k_w, (Cout, Cin, KH, KW), minval=-bound, maxval=bound,
                           dtype=jnp.float32)
    b = jax.random.uniform(k_b, (Cout,), minval=-bound, maxval=bound,
                           dtype=jnp.float32)

    out = conv2d_pallas(x, w, b)
    out = jax.block_until_ready(out)

    # Sanity check against XLA's reference convolution.
    ref = jax.lax.conv_general_dilated(
        x, w, window_strides=(1, 1), padding="VALID",
        dimension_numbers=("NCHW", "OIHW", "NCHW"),
    ) + b.reshape(1, Cout, 1, 1)
    assert out.shape == (N, Cout, H - KH + 1, W - KW + 1)
    assert jnp.allclose(out, ref, atol=1e-5, rtol=1e-5)

    print("KERNEL_OK")
</pallas_src>

<mosaic_0001>
module attributes {stable_mosaic.version = 11 : i64} {
  func.func @conv_kernel(%arg0: i32, %arg1: memref<1x3x16x16xf32, #tpu.memory_space<vmem>>, %arg2: memref<6x27xf32, #tpu.memory_space<vmem>>, %arg3: memref<6x1xf32, #tpu.memory_space<vmem>>, %arg4: memref<1x6x196xf32, #tpu.memory_space<vmem>>) attributes {dimension_semantics = [#tpu.dimension_semantics<parallel>], iteration_bounds = array<i64: 2>, scalar_prefetch = 0 : i64, scratch_operands = 0 : i64, tpu.core_type = #tpu.core_type<tc>, window_params = [{transform_indices = @transform_0, window_bounds = array<i64: 1, 3, 16, 16>}, {pipeline_mode = #tpu.pipeline_mode<synchronous>, transform_indices = @transform_1, window_bounds = array<i64: 6, 27>}, {pipeline_mode = #tpu.pipeline_mode<synchronous>, transform_indices = @transform_2, window_bounds = array<i64: 6, 1>}, {transform_indices = @transform_3, window_bounds = array<i64: 1, 6, 196>}]} {
    %c0 = arith.constant 0 : index
    %c0_0 = arith.constant 0 : index
    %0 = vector.load %arg2[%c0, %c0_0] : memref<6x27xf32, #tpu.memory_space<vmem>>, vector<6x27xf32>
    %c0_1 = arith.constant 0 : index
    %c0_2 = arith.constant 0 : index
    %1 = vector.load %arg3[%c0_1, %c0_2] : memref<6x1xf32, #tpu.memory_space<vmem>>, vector<6x1xf32>
    %c0_3 = arith.constant 0 : index
    %c0_4 = arith.constant 0 : index
    %c0_5 = arith.constant 0 : index
    %c0_6 = arith.constant 0 : index
    %2 = vector.load %arg1[%c0_3, %c0_4, %c0_5, %c0_6] : memref<1x3x16x16xf32, #tpu.memory_space<vmem>>, vector<1x3x16x16xf32>
    %3 = vector.shape_cast %2 : vector<1x3x16x16xf32> to vector<3x16x16xf32>
    %4 = vector.extract_strided_slice %3 {offsets = [0, 0, 0], sizes = [3, 14, 14], strides = [1, 1, 1]} : vector<3x16x16xf32> to vector<3x14x14xf32>
    %5 = vector.shape_cast %4 : vector<3x14x14xf32> to vector<3x196xf32>
    %6 = vector.extract_strided_slice %3 {offsets = [0, 0, 1], sizes = [3, 14, 14], strides = [1, 1, 1]} : vector<3x16x16xf32> to vector<3x14x14xf32>
    %7 = vector.shape_cast %6 : vector<3x14x14xf32> to vector<3x196xf32>
    %8 = vector.extract_strided_slice %3 {offsets = [0, 0, 2], sizes = [3, 14, 14], strides = [1, 1, 1]} : vector<3x16x16xf32> to vector<3x14x14xf32>
    %9 = vector.shape_cast %8 : vector<3x14x14xf32> to vector<3x196xf32>
    %10 = vector.extract_strided_slice %3 {offsets = [0, 1, 0], sizes = [3, 14, 14], strides = [1, 1, 1]} : vector<3x16x16xf32> to vector<3x14x14xf32>
    %11 = vector.shape_cast %10 : vector<3x14x14xf32> to vector<3x196xf32>
    %12 = vector.extract_strided_slice %3 {offsets = [0, 1, 1], sizes = [3, 14, 14], strides = [1, 1, 1]} : vector<3x16x16xf32> to vector<3x14x14xf32>
    %13 = vector.shape_cast %12 : vector<3x14x14xf32> to vector<3x196xf32>
    %14 = vector.extract_strided_slice %3 {offsets = [0, 1, 2], sizes = [3, 14, 14], strides = [1, 1, 1]} : vector<3x16x16xf32> to vector<3x14x14xf32>
    %15 = vector.shape_cast %14 : vector<3x14x14xf32> to vector<3x196xf32>
    %16 = vector.extract_strided_slice %3 {offsets = [0, 2, 0], sizes = [3, 14, 14], strides = [1, 1, 1]} : vector<3x16x16xf32> to vector<3x14x14xf32>
    %17 = vector.shape_cast %16 : vector<3x14x14xf32> to vector<3x196xf32>
    %18 = vector.extract_strided_slice %3 {offsets = [0, 2, 1], sizes = [3, 14, 14], strides = [1, 1, 1]} : vector<3x16x16xf32> to vector<3x14x14xf32>
    %19 = vector.shape_cast %18 : vector<3x14x14xf32> to vector<3x196xf32>
    %20 = vector.extract_strided_slice %3 {offsets = [0, 2, 2], sizes = [3, 14, 14], strides = [1, 1, 1]} : vector<3x16x16xf32> to vector<3x14x14xf32>
    %21 = vector.shape_cast %20 : vector<3x14x14xf32> to vector<3x196xf32>
    %22 = tpu.concatenate %5, %7, %9, %11, %13, %15, %17, %19, %21 in 0 : vector<3x196xf32>, vector<3x196xf32>, vector<3x196xf32>, vector<3x196xf32>, vector<3x196xf32>, vector<3x196xf32>, vector<3x196xf32>, vector<3x196xf32>, vector<3x196xf32> -> vector<27x196xf32>
    %cst = arith.constant dense<0.000000e+00> : vector<6x196xf32>
    %23 = tpu.matmul %0, %22, %cst {dimension_numbers = #tpu.dot_dimension_numbers<[1], [0], [0], [1], [0, 0, 1, 1], [], []>} : vector<6x27xf32>, vector<27x196xf32>, vector<6x196xf32> -> vector<6x196xf32>
    %24 = vector.broadcast %1 : vector<6x1xf32> to vector<6x196xf32>
    %25 = arith.addf %23, %24 : vector<6x196xf32>
    %c0_7 = arith.constant 0 : index
    %c0_8 = arith.constant 0 : index
    %c0_9 = arith.constant 0 : index
    %26 = vector.load %arg4[%c0_7, %c0_8, %c0_9] : memref<1x6x196xf32, #tpu.memory_space<vmem>>, vector<1x6x196xf32>
    %27 = vector.shape_cast %26 : vector<1x6x196xf32> to vector<6x196xf32>
    %28 = vector.shape_cast %25 : vector<6x196xf32> to vector<1x6x196xf32>
    tpu.vector_store %arg4[%c0_7, %c0_8, %c0_9], %28 {strides = array<i32>} : memref<1x6x196xf32, #tpu.memory_space<vmem>>, vector<1x6x196xf32>,
    return
  }
  func.func @transform_0(%arg0: i32) -> (i32, i32, i32, i32) {
    %c0_i32 = arith.constant 0 : i32
    %c0_i32_0 = arith.constant 0 : i32
    %c0_i32_1 = arith.constant 0 : i32
    %c0_i32_2 = arith.constant 0 : i32
    return %arg0, %c0_i32, %c0_i32_0, %c0_i32_1 : i32, i32, i32, i32
  }
  func.func @transform_1(%arg0: i32) -> (i32, i32) {
    %c0_i32 = arith.constant 0 : i32
    %c0_i32_0 = arith.constant 0 : i32
    %c0_i32_1 = arith.constant 0 : i32
    return %c0_i32, %c0_i32_0 : i32, i32
  }
  func.func @transform_2(%arg0: i32) -> (i32, i32) {
    %c0_i32 = arith.constant 0 : i32
    %c0_i32_0 = arith.constant 0 : i32
    %c0_i32_1 = arith.constant 0 : i32
    return %c0_i32, %c0_i32_0 : i32, i32
  }
  func.func @transform_3(%arg0: i32) -> (i32, i32, i32) {
    %c0_i32 = arith.constant 0 : i32
    %c0_i32_0 = arith.constant 0 : i32
    %c0_i32_1 = arith.constant 0 : i32
    return %arg0, %c0_i32, %c0_i32_0 : i32, i32, i32
  }
}

</mosaic_0001>

<bundles_post_ra>
// kernel: tpu_custom_call.1
= control target key start
LH: loop header
LB: loop body
LE: loop exit
PB: predicated region body
PF: predicated region fallthrough
CT: control target
= control target key end

     0   :  { %8 = vsyncpa [#allocation3], 0  ;;  %s4000_s0 = inlined_call_operand.hbm [shape: f32[2,3,16,16], index: 0, kind: input, shape index: {}]   ;;  %s4001_s1 = inlined_call_operand.vmem [shape: f32[6,27], index: 1, kind: input, shape index: {}]   ;;  %s4002_s2 = inlined_call_operand.vmem [shape: f32[6,1], index: 2, kind: input, shape index: {}]   ;;  %s4003_s3 = inlined_call_operand.vmem [shape: f32[2,6,196], index: 3, kind: output, shape index: {}]  }
   0x1   :  { %10 = vsyncpa [#allocation3 + $0x1], 0  ;;  %s2678_s12 = smov 0   ;;  %s2680_s13 = smov 0  }
   0x2   :  { %s2682_s14 = smov 0   ;;  %s2684_s15 = smov 0  }
   0x3 LB: > { %s2697_s16 = sadd.s32 4294967295, %s2634_s15   ;;  %s2700_s17 = sadd.s32 1, %s2634_s15   ;;  %s2634_s15 = sphi %s2684_s15, %s4061_s15   ;;  %s2630_s14 = sphi %s2682_s14, %s4060_s14   ;;  %s2626_s13 = sphi %s2680_s13, %s4059_s13   ;;  %s2622_s12 = sphi %s2678_s12, %s4058_s12  }
   0x4   : > { %s20_s18 = ssub.s32 %s2634_s15, %s2700_s17  ;;  %s23_s19 = sadd.s32 1, %s2630_s14 }
   0x5   : > { %p21_p0 = scmp.eq.s32.totalorder %s20_s18, 0  ;;  %p30_p1 = scmp.ne.s32.totalorder %s2630_s14, %s2626_s13 }
   0x6   : > { %p31_p2 = scmp.eq.s32.totalorder %s2634_s15, 0  ;;  %p36_p3 = scmp.ne.s32.totalorder %s2626_s13, %s2622_s12 }
   0x7   : > { %s2710_s20 = scalar_select %p21_p0, %s2630_s14, %s23_s19  }
   0x8   : > { %p32_p4 = por %p31_p2, %p30_p1  ;;  %p37_p5 = scmp.eq.s32.totalorder %s2697_s16, 0 }
   0x9   : > { %p2254_p6 = scmp.lt.s32.totalorder %s2634_s15, 2  ;;  %s134_s22 = sand.u32 1, %s2630_s14  }
   0xa   : > { %p2714_p7 = por %p37_p5, %p36_p3  ;;  %s2245_s23 = smul.u32 48, %s134_s22 }
   0xb   : > { %s2246_s24 = smul.u32 768, %s2634_s15  ;;  %p2720_p8 = pnand %p2254_p6, %p32_p4 }
   0xc   : > { %s138_s29 = scalar_lea.vmem [#allocation2], %s2245_s23  ;;  %s2732_s4 = scalar_lea.sflag [#allocation3], %s134_s22 }
   0xd   : > { %s2727_s28 = scalar_lea.hbm %s4000_s0, %s2246_s24  ;;  %s145_s30 = sshll.u32 %s138_s29, 4  ;;  %s2729_s30 = int_to_ptr.vmem [resolvable:$true] %s145_s30 }
   0xe   : > { %s2570_s5 = scalar_lea.hbm %s2727_s28, 768  ;;  %p2572_p11 = pneg %p2720_p8 }
   0xf   : > { %p2571_p10 = scmp.ne.s32.totalorder %s2727_s28, %s2570_s5  ;;  %s2575_s8 = scalar_lea.hbm %s4000_s0, 1536 }
  0x10   : > { %p2576_p0 = scmp.lt.u32.totalorder %s2727_s28, %s4000_s0  ;;  %p2577_p1 = scmp.lt.u32.totalorder %s2575_s8, %s2570_s5 }
  0x11   : > { %p2573_p12 = pnand %p2572_p11, %p2571_p10  ;;  %p2579_p3 = scmp.lt.u32.totalorder %s2570_s5, %s2727_s28 }
  0x12   : > { %p2578_p2 = por %p2577_p1, %p2576_p0 }
  0x13   : > { %p2574_p13 = pneg %p2573_p12 }
  0x14   : > { %p2580_p4 = por %p2579_p3, %p2578_p2 }
  0x16   : > { %p2581_p5 = pnand %p2580_p4, %p2574_p13 }
  0x18   : > { %2584 = shalt.err (!%p2581_p5)
}
  0x19   : > { %s2585_s11 = scalar_lea.vmem %s2729_s30, 768  ;;  %s2636_s12 = smov [#allocation2]  }
  0x1a   : > { %p2586_p6 = scmp.ne.s32.totalorder %s2729_s30, %s2585_s11  ;;  %s2590_s18 = sshll.u32 %s2636_s12, 4  ;;  %s2591_s18 = int_to_ptr.vmem [resolvable:$false] %s2590_s18 }
  0x1b   : > { %s2592_s19 = scalar_lea.vmem %s2591_s18, 1536  ;;  %p2593_p9 = scmp.lt.s32.totalorder %s2729_s30, %s2591_s18 }
  0x1c   : > { %p2588_p10 = pnand %p2586_p6, %p2572_p11  ;;  %p2594_p0 = scmp.lt.s32.totalorder %s2592_s19, %s2585_s11 }
  0x1e   : > { %p2589_p12 = pneg %p2588_p10  ;;  %p2595_p1 = por %p2594_p0, %p2593_p9 }
  0x20   : > { %p2596_p2 = pnand %p2595_p1, %p2589_p12 }
  0x22   : > { %2599 = shalt.err (!%p2596_p2)
}
  0x23   : > { %s2637_s22 = smov 128   ;;  %s2638_s23 = smov 8  }
  0x24   : > { %2253 = dma.hbm_to_vmem [thread:$0]  (!%p2720_p8), %s2727_s28, 768, %s2729_s30, %s2732_s4, %s2637_s22, %s2637_s22, %s2638_s23  }
  0x25   : > { %p153_p11 = scmp.lt.s32.totalorder %s2634_s15, 3  ;;  %p4023_p13 = scmp.ge.s32.totalorder %s2634_s15, 1 }
  0x27   : > { %p154_p3 = pnand %p4023_p13, %p153_p11 }
  0x29   : > { %157 = sbr.rel (%p154_p3) target bundleno = 677 (0x2a5), region = 32 }
  0x30   : > { %s159_s24 = sand.u32 1, %s2626_s13  }
  0x31   : > { %s2247_s26 = smul.u32 48, %s159_s24  ;;  %s160_s27 = scalar_lea.sflag [#allocation3], %s159_s24 }
  0x33   : > { %s163_s29 = scalar_lea.vmem [#allocation2], %s2247_s26 }
  0x34   : > { %2617 = dma.done.wait (%p2714_p7), %s160_s27, 768  }
  0x35   : > { %2619 = vsyncadd (%p2714_p7), %s160_s27, 4294966528  ;;  %v2639_v0 = vmov 1983009808   ;;  %v204_v2 = vlaneseq  ;;  %v4004_v3 = vmov 0.0   ;;  %v193_v6 = vld [vmem:[%s163_s29] sm:$0xff]  ;;  %v2771_v8 = vld [vmem:[%s163_s29 + $0x28] sm:$0xff] }
  0x36   : > { %v202_v1 = vunpack.c.l.s4 %v2639_v0  ;;  %2145 = vmatprep.mubr.f32.mxu0 %v4004_v3  ;;  %v197_v7 = vld [vmem:[%s163_s29 + $0x20] sm:$0xff]  ;;  %vm803_vm0 = vcmask 1046528   ;;  %vm1404_vm1 = vcmask 1045504   ;;  %s2641_s15 = smov 127   ;;  %s2642_s21 = smov 126   ;;  %v2776_v10 = vrot.slane %v2771_v8, 1 }
  0x37   : > { %v2769_v5 = vshrl.u32 %v204_v2, 7  ;;  %401 = vrot.lane.b32.xlu1 %v193_v6, %s2641_s15  ;;  %602 = vrot.lane.b32.xlu0 %v193_v6, %s2642_s21  ;;  %v810_v9 = vrot.slane %v197_v7, 1  ;;  %v2778_v11 = vld [vmem:[%s163_s29 + $0x8] sm:$0xff]  ;;  %v804_v12 = vrot.slane %v193_v6, 1  ;;  %v195_v13 = vld [vmem:[%s163_s29 + $0x10] sm:$0xff]  ;;  %v1405_v14 = vrot.slane %v193_v6, 2 }
  0x38   : > { %v203_v4 = vunpack.c.0.s8 %v202_v1  ;;  %v2781_v15 = vrot.slane %v2778_v11, 1  ;;  %v2783_v16 = vld [vmem:[%s163_s29 + $0x18] sm:$0xff]  ;;  %v807_v17 = vrot.slane %v195_v13, 1  ;;  %v2786_v18 = vrot.slane %v2778_v11, 2  ;;  %s2644_s25 = smov 28   ;;  %s2645_s28 = smov 56  }
  0x39   : > { %v1411_v19 = vrot.slane %v197_v7, 2  ;;  %v2792_v21 = vrot.slane %v2783_v16, 1  ;;  %v2795_v22 = vrot.slane %v2771_v8, 2  ;;  %v1408_v23 = vrot.slane %v195_v13, 2  ;;  %s2646_s30 = smov 84   ;;  %s2647_s4 = smov 112  }
  0x3a   : > { %4024 = vst [vmem:[#allocation5_spill] sm:$0xff] %v2786_v18  ;;  %v2789_v20 = vsub.s32 %v203_v4, %v2769_v5  ;;  %v812_v24 = vsel %vm803_vm0, %v810_v9, %v2776_v10  ;;  %v806_v25 = vsel %vm803_vm0, %v804_v12, %v2781_v15  ;;  %v2803_v26 = vsel %vm1404_vm1, %v1405_v14, %v2786_v18  ;;  %s2648_s5 = smov 12   ;;  %s2649_s6 = smov 40  }
  0x3b   : > { %4025 = vst [vmem:[#allocation6_spill] sm:$0xff] %v2795_v22  ;;  %v2806_v27 = vrot.slane %v2783_v16, 2  ;;  %409 = vrot.lane.b32.xlu1 %v197_v7, %s2641_s15  ;;  %610 = vrot.lane.b32.xlu0 %v197_v7, %s2642_s21  ;;  %v819_v28 = vcombine.low %v806_v25, %v812_v24  ;;  %v820_v29 = vcombine.high %v806_v25, %v812_v24  ;;  %s2650_s7 = smov 98   ;;  %s2651_s8 = smov 14   ;;  %vm369_vm2 = vcmask 113664  }
  0x3c   : > { %v809_v30 = vsel %vm803_vm0, %v807_v17, %v2792_v21  ;;  %v2818_v33 = vsel %vm1404_vm1, %v1411_v19, %v2795_v22  ;;  %v200_v47 = vcombine.high %v193_v6, %v197_v7  ;;  %v215_v48 = vcombine.high %v195_v13, %v4004_v3  ;;  %s2652_s9 = smov 42   ;;  %s2653_s10 = smov 70  }
  0x3d   : > { %4026 = vst [vmem:[#allocation7_spill] sm:$0xff] %v2806_v27  ;;  %v835_v31 = vcombine.high %v809_v30, %v4004_v3  ;;  %v2814_v32 = vrot.slane %v809_v30, %v2789_v20  ;;  %v2822_v34 = vsel %vm1404_vm1, %v1408_v23, %v2806_v27  ;;  %v2825_v35 = vrot.slane %v819_v28, %v2789_v20  ;;  %s2654_s11 = smov 26   ;;  %s2655_s12 = smov 54  }
  0x3e   : > { %v2828_v36 = vrot.slane %v820_v29, %v2789_v20  ;;  %v1420_v37 = vcombine.low %v2803_v26, %v2818_v33  ;;  %v1421_v38 = vcombine.high %v2803_v26, %v2818_v33  ;;  %v2839_v40 = vrot.slane %v2822_v34, %v2789_v20  ;;  %p186_p7 = scmp.lt.s32.totalorder %s2697_s16, 1 }
  0x3f   : > { %v2835_v39 = vrot.slane %v835_v31, %v2789_v20  ;;  %1010 = vrot.lane.b32.xlu1 %v812_v24, %s2641_s15  ;;  %1002 = vrot.lane.b32.xlu0 %v806_v25, %s2641_s15  ;;  %v850_v41 = vcombine.low %v2825_v35, %v2814_v32  ;;  %v851_v43 = vcombine.high %v2825_v35, %v2814_v32  ;;  %vm371_vm3 = vcmask 228352  }
  0x40   : > { %v2846_v42 = vrot.slane %v1420_v37, %v2789_v20  ;;  %v199_v49 = vcombine.low %v193_v6, %v197_v7  ;;  %v2862_v50 = vrot.slane %v200_v47, %v2789_v20  ;;  %v2865_v51 = vrot.slane %v215_v48, %v2789_v20  ;;  %s4063_s16 = smov (!%p186_p7, %s2697_s16), 1 }
  0x41   : > { %v866_v44 = vcombine.low %v2828_v36, %v2835_v39  ;;  %v867_v45 = vcombine.high %v2828_v36, %v2835_v39  ;;  %v2871_v53 = vrot.slane %v195_v13, %v2789_v20  ;;  %v886_v56 = vcombine.low %v2781_v15, %v2776_v10  ;;  %s2234_s24 = sshll.u32 %s4063_s16, 4 }
  0x42   : > { %v2868_v52 = vrot.slane %v199_v49, %v2789_v20  ;;  %v246_v54 = vcombine.low %v2862_v50, %v2865_v51  ;;  %v887_v57 = vcombine.high %v2781_v15, %v2776_v10  ;;  %v247_v58 = vcombine.high %v2862_v50, %v2865_v51  ;;  %s190_s29 = scalar_lea.vmem %s4003_s3, %s2234_s24 }
  0x43   : > { %1203 = vrot.lane.b32.xlu1 %v806_v25, %s2642_s21  ;;  %606 = vrot.lane.b32.xlu0 %v195_v13, %s2642_s21  ;;  %v2892_v60 = vrot.slane %v886_v56, %v2789_v20  ;;  %v2896_v61 = vrot.slane %v2792_v21, %v2789_v20  ;;  %v2903_v63 = vcombine.high %v2792_v21, %v4004_v3  ;;  %v2643_v25 = vmov 1934713408  }
  0x44   : > { %v2899_v62 = vrot.slane %v887_v57, %v2789_v20  ;;  %v266_v4 = vcombine.low %v2778_v11, %v2771_v8  ;;  %v2930_v7 = vrot.slane %v2783_v16, %v2789_v20  ;;  %vm4020_vm4 = vcmask 343040  }
  0x45   : > { %v910_v0 = vcombine.low %v2892_v60, %v2896_v61  ;;  %v911_v1 = vcombine.high %v2892_v60, %v2896_v61  ;;  %vm375_vm5 = vcmask 457728   ;;  %vm377_vm6 = vcmask 572416  }
  0x46   : > { %v926_v2 = vcombine.low %v2899_v62, %v2903_v63  ;;  %v2926_v6 = vrot.slane %v266_v4, %v2789_v20  ;;  %4028 = vst [vmem:[#allocation9_spill] sm:$0xff] %v2930_v7  ;;  %vm379_vm7 = vcmask 687104   ;;  %vm381_vm8 = vcmask 801792  }
  0x47   : > { %405 = vrot.lane.b32.xlu1 %v195_v13, %s2641_s15  ;;  %1211 = vrot.lane.b32.xlu0 %v812_v24, %s2642_s21  ;;  %v267_v13 = vcombine.high %v2778_v11, %v2771_v8  ;;  %vm383_vm9 = vcmask 916480   ;;  %vm385_vm10 = vcmask 1031168   ;;  %vm387_vm11 = vcmask 97280  }
  0x48   : > { %4027 = vst [vmem:[#allocation8_spill] sm:$0xff] %v2926_v6  ;;  %v291_v9 = vcombine.high %v2926_v6, %v2930_v7  ;;  %vm389_vm12 = vcmask 211968   ;;  %vm2052_vm13 = vcmask 1040384   ;;  %vm391_vm14 = vcmask 326656  }
  0x49   : > { %v2953_v14 = vrot.slane %v267_v13, %v2789_v20  ;;  %vm393_vm15 = vcmask 441344  }
  0x4b   : > { %604 = vrot.lane.b32.xlu1 %v2778_v11, %s2642_s21  ;;  %1006 = vrot.lane.b32.xlu0 %v809_v30, %s2641_s15 }
  0x4f   : > { %1207 = vrot.lane.b32.xlu1 %v809_v30, %s2642_s21  ;;  %612 = vrot.lane.b32.xlu0 %v2771_v8, %s2642_s21 }
  0x53   : > { %411 = vrot.lane.b32.xlu1 %v2771_v8, %s2641_s15  ;;  %403 = vrot.lane.b32.xlu0 %v2778_v11, %s2641_s15  ;;  %v2971_v11 = vrot.slane %v1421_v38, %v2789_v20 }
  0x57   : > { %1012 = vrot.lane.b32.xlu1 %v2776_v10, %s2641_s15  ;;  %1004 = vrot.lane.b32.xlu0 %v2781_v15, %s2641_s15 }
  0x5b   : > { %1205 = vrot.lane.b32.xlu1 %v2781_v15, %s2642_s21  ;;  %608 = vrot.lane.b32.xlu0 %v2783_v16, %s2642_s21  ;;  %v2957_v15 = vcombine.high %v2783_v16, %v4004_v3 }
  0x5f   : > { %1603 = vrot.lane.b32.xlu1 %v2803_v26, %s2641_s15  ;;  %1213 = vrot.lane.b32.xlu0 %v2776_v10, %s2642_s21  ;;  %v1436_v10 = vcombine.high %v2822_v34, %v4004_v3 }
  0x63   : > { %407 = vrot.lane.b32.xlu1 %v2783_v16, %s2641_s15  ;;  %1611 = vrot.lane.b32.xlu0 %v2818_v33, %s2641_s15  ;;  %v2974_v16 = vrot.slane %v1436_v10, %v2789_v20 }
  0x67   : > { %1209 = vrot.lane.b32.xlu1 %v2792_v21, %s2642_s21  ;;  %1008 = vrot.lane.b32.xlu0 %v2792_v21, %s2641_s15 }
  0x6b   : > { %1607 = vrot.lane.b32.xlu0 %v2822_v34, %s2641_s15  ;;  %1804 = vrot.lane.b32.xlu1 %v2803_v26, %s2642_s21  ;;  %v233_v26 = vunpack.c.l.s4 %v2643_v25 }
  0x6d   : > { %v234_v30 = vunpack.c.0.s8 %v233_v26 }
  0x6f   : > { %1605 = vrot.lane.b32.xlu1 %v2786_v18, %s2641_s15  ;;  %1812 = vrot.lane.b32.xlu0 %v2818_v33, %s2642_s21  ;;  %v3005_v38 = vsub.s32 %v234_v30, %v2769_v5 }
  0x71   : > { %v865_v5 = vrot.slane %v851_v43, %v3005_v38  ;;  %v925_v32 = vrot.slane %v911_v1, %v3005_v38  ;;  %v933_v61 = vrot.slane %v926_v2, %v3005_v38  ;;  %v3120_v62 = vrot.slane %v247_v58, %v3005_v38 }
  0x73   : > { %1808 = vrot.lane.b32.xlu1 %v2822_v34, %s2642_s21  ;;  %1613 = vrot.lane.b32.xlu0 %v2795_v22, %s2641_s15 }
  0x77   : > { %1609 = vrot.lane.b32.xlu0 %v2806_v27, %s2641_s15  ;;  %1806 = vrot.lane.b32.xlu1 %v2786_v18, %s2642_s21 }
  0x7b   : > { %1814 = vrot.lane.b32.xlu0 %v2795_v22, %s2642_s21  ;;  %1810 = vrot.lane.b32.xlu1 %v2806_v27, %s2642_s21 }
  0xa9   : > { %v2996_v23 = vpop.permute.xlu1 %401  ;;  %v603_v24 = vpop.permute.xlu0 %602 }
  0xad   : > { %v2998_v28 = vpop.permute.xlu1 %409  ;;  %v611_v29 = vpop.permute.xlu0 %610 }
  0xae   : > { %v620_v34 = vcombine.low %v603_v24, %v611_v29  ;;  %v621_v37 = vcombine.high %v603_v24, %v611_v29  ;;  %v419_v63 = vcombine.low %v2996_v23, %v2998_v28  ;;  %v420_v2 = vcombine.high %v2996_v23, %v2998_v28 }
  0xb0   : > { %v3010_v49 = vrot.slane %v620_v34, %v2789_v20  ;;  %v635_v4 = vrot.slane %v621_v37, %v2789_v20  ;;  %v874_v34 = vrot.slane %v866_v44, %v3005_v38  ;;  %v881_v44 = vrot.slane %v867_v45, %v3005_v38 }
  0xb1   : > { %v3000_v31 = vpop.permute.xlu1 %1010  ;;  %v3002_v33 = vpop.permute.xlu0 %1002  ;;  %v3067_v45 = vrot.slane %v850_v41, %v3005_v38 }
  0xb2   : > { %v1021_v51 = vcombine.high %v3002_v33, %v3000_v31 }
  0xb3   : > { %4029 = vst [vmem:[#allocation10_spill] sm:$0xff] %v3067_v45  ;;  %v3085_v35 = vcombine.high %v3067_v45, %v4004_v3 }
  0xb5   : > { %v3007_v47 = vpop.permute.xlu1 %1203  ;;  %v607_v48 = vpop.permute.xlu0 %606 }
  0xb6   : > { %v636_v56 = vcombine.high %v607_v48, %v4004_v3  ;;  %v3014_v57 = vrot.slane %v607_v48, %v2789_v20 }
  0xb8   : > { %v650_v13 = vrot.slane %v636_v56, %v2789_v20  ;;  %v652_v10 = vcombine.high %v3010_v49, %v3014_v57 }
  0xb9   : > { %v3024_v24 = vpop.permute.xlu1 %405  ;;  %v3026_v25 = vpop.permute.xlu0 %1211 }
  0xba   : > { %v3029_v26 = vrot.slane %v652_v10, %v3005_v38  ;;  %v667_v29 = vcombine.low %v635_v4, %v650_v13  ;;  %v668_v30 = vcombine.high %v635_v4, %v650_v13 }
  0xbc   : > { %v2308_v37 = vpack.i.bf16 %v865_v5, %v3029_v26  ;;  %v3037_v48 = vrot.slane %v667_v29, %v3005_v38  ;;  %v3044_v4 = vrot.slane %v668_v30, %v3005_v38 }
  0xbd   : > { %v605_v43 = vpop.permute.xlu1 %604  ;;  %v3039_v56 = vpop.permute.xlu0 %1006 }
  0xbe   : > { %2309 = vrot.lane.b32.xlu0 %v2308_v37, %s2644_s25  ;;  %v2313_v10 = vpack.i.bf16 %v874_v34, %v3037_v48  ;;  %v2323_v46 = vpack.i.bf16 %v881_v44, %v3044_v4 }
  0xc0   : > { %2314 = vrot.lane.b32.xlu1 %v2313_v10, %s2645_s28 }
  0xc1   : > { %v3051_v13 = vpop.permute.xlu1 %1207  ;;  %v613_v29 = vpop.permute.xlu0 %612 }
  0xc2   : > { %v687_v36 = vcombine.low %v605_v43, %v613_v29  ;;  %v688_v39 = vcombine.high %v605_v43, %v613_v29  ;;  %v918_v43 = vrot.slane %v910_v0, %v3005_v38  ;;  %v651_v0 = vcombine.low %v3010_v49, %v3014_v57 }
  0xc3   : > { %v3128_v49 = vcombine.high %v925_v32, %v4004_v3 }
  0xc4   : > { %2324 = vrot.lane.b32.xlu1 %v2323_v46, %s2646_s30  ;;  %v695_v46 = vrot.slane %v687_v36, %v2789_v20  ;;  %v702_v19 = vrot.slane %v688_v39, %v2789_v20  ;;  %v3091_v36 = vcombine.high %v865_v5, %v4004_v3  ;;  %v3137_v58 = vrot.slane %v651_v0, %v3005_v38 }
  0xc5   : > { %v3055_v37 = vpop.permute.xlu1 %411  ;;  %v3057_v30 = vpop.permute.xlu0 %403  ;;  %v435_v0 = vcombine.high %v3024_v24, %v4004_v3 }
  0xc6   : > { %4030 = vst [vmem:[#allocation11_spill] sm:$0xff] %v3137_v58 }
  0xc9   : > { %v3059_v12 = vpop.permute.xlu1 %1012  ;;  %v3061_v17 = vpop.permute.xlu0 %1004 }
  0xcd   : > { %v3069_v10 = vpop.permute.xlu1 %1205  ;;  %v609_v59 = vpop.permute.xlu0 %608 }
  0xce   : > { %v709_v55 = vrot.slane %v609_v59, %v2789_v20  ;;  %v710_v21 = vcombine.high %v609_v59, %v4004_v3  ;;  %v3088_v59 = vcombine.high %v881_v44, %v4004_v3 }
  0xd0   : > { %v711_v41 = vcombine.low %v695_v46, %v709_v55  ;;  %v712_v29 = vcombine.high %v695_v46, %v709_v55  ;;  %v727_v39 = vcombine.low %v702_v19, %v710_v21  ;;  %v3104_v55 = vcombine.high %v874_v34, %v4004_v3 }
  0xd1   : > { %v3095_v8 = vpop.permute.xlu1 %1603  ;;  %v3097_v60 = vpop.permute.xlu0 %1213  ;;  %v3114_v19 = vrot.slane %v246_v54, %v3005_v38  ;;  %v934_v21 = vcombine.high %v918_v43, %v4004_v3  ;;  %v1020_v54 = vcombine.low %v3002_v33, %v3000_v31  ;;  %v3147_v46 = vcombine.high %v933_v61, %v4004_v3 }
  0xd2   : > { %v719_v1 = vrot.slane %v711_v41, %v3005_v38  ;;  %v3108_v5 = vrot.slane %v712_v29, %v3005_v38  ;;  %v3140_v23 = vrot.slane %v727_v39, %v3005_v38  ;;  %v1288_v31 = vcombine.low %v3069_v10, %v3097_v60 }
  0xd3   : > { %v3160_v33 = vrot.slane %v291_v9, %v3005_v38  ;;  %v3169_v29 = vrot.slane %v419_v63, %v2789_v20  ;;  %v1036_v39 = vcombine.high %v3039_v56, %v4004_v3  ;;  %v3181_v9 = vrot.slane %v420_v2, %v2789_v20 }
  0xd4   : > { %v2333_v57 = vpack.i.bf16 %v918_v43, %v719_v1  ;;  %v2318_v34 = vpack.i.bf16 %v925_v32, %v3108_v5  ;;  %v735_v50 = vcombine.high %v719_v1, %v4004_v3  ;;  %v3151_v43 = vrot.slane %v3024_v24, %v2789_v20 }
  0xd5   : > { %v3142_v28 = vpop.permute.xlu1 %407  ;;  %v3144_v44 = vpop.permute.xlu0 %1611  ;;  %4031 = vst [vmem:[#allocation12_spill] sm:$0xff] %v3160_v33  ;;  %v4032_v32 = vcombine.low %v2953_v14, %v2957_v15  ;;  %v3177_v1 = vrot.slane %v3039_v56, %v2789_v20  ;;  %v3184_v14 = vrot.slane %v1020_v54, %v2789_v20  ;;  %v686_v24 = vcombine.high %v3044_v4, %v4004_v3 }
  0xd6   : > { %2334 = vrot.lane.b32.xlu1 %v2333_v57, %s2647_s4  ;;  %2319 = vrot.lane.b32.xlu0 %v2318_v34, %s2648_s5  ;;  %v2353_v15 = vpack.i.bf16 %v934_v21, %v735_v50  ;;  %v3189_v63 = vrot.slane %v1021_v51, %v2789_v20  ;;  %v1222_v56 = vcombine.high %v3007_v47, %v3026_v25 }
  0xd7   : > { %v3166_v41 = vrot.slane %v4032_v32, %v3005_v38  ;;  %v2328_v34 = vpack.i.bf16 %v933_v61, %v3140_v23  ;;  %v683_v2 = vcombine.high %v3137_v58, %v4004_v3  ;;  %v451_v54 = vcombine.high %v3169_v29, %v3151_v43 }
  0xd8   : > { %v1289_v21 = vcombine.high %v3069_v10, %v3097_v60  ;;  %v3201_v4 = vrot.slane %v1288_v31, %v2789_v20  ;;  %v3208_v51 = vrot.slane %v435_v0, %v2789_v20  ;;  %v3211_v61 = vrot.slane %v1036_v39, %v2789_v20 }
  0xd9   : > { %v1210_v57 = vpop.permute.xlu1 %1209  ;;  %v1009_v32 = vpop.permute.xlu0 %1008  ;;  %v1052_v3 = vcombine.high %v3184_v14, %v3177_v1  ;;  %v1087_v10 = vcombine.low %v3061_v17, %v3059_v12  ;;  %v4033_v60 = vmov 0.0   ;;  %v2368_v39 = vpack.i.bf16 %v3088_v59, %v686_v24 }
  0xda   : > { %v3204_v50 = vrot.slane %v1210_v57, %v2789_v20  ;;  %2354 = vrot.lane.b32.xlu1 %v2353_v15, %s2642_s21  ;;  %2329 = vrot.lane.b32.xlu0 %v2328_v34, %s2649_s6  ;;  %v1237_v31 = vcombine.high %v3051_v13, %v4033_v60  ;;  %v1311_v15 = vcombine.high %v1210_v57, %v4033_v60 }
  0xdb   : > { %v486_v58 = vcombine.low %v3057_v30, %v3055_v37  ;;  %v3227_v45 = vrot.slane %v1009_v32, %v2789_v20  ;;  %v2338_v34 = vpack.i.bf16 %v3085_v35, %v683_v2  ;;  %v684_v18 = vcombine.high %v3029_v26, %v4033_v60 }
  0xdc   : > { %v1313_v0 = vcombine.high %v3201_v4, %v3204_v50  ;;  %v3235_v57 = vrot.slane %v451_v54, %v3005_v38  ;;  %v1303_v22 = vrot.slane %v1289_v21, %v2789_v20  ;;  %v685_v24 = vcombine.high %v3037_v48, %v4033_v60 }
  0xdd   : > { %v3229_v27 = vpop.permute.xlu0 %1607  ;;  %v3245_v7 = vrot.slane %v1052_v3, %v3005_v38  ;;  %v3248_v35 = vrot.slane %v1087_v10, %v2789_v20  ;;  %v3252_v26 = vrot.slane %v3142_v28, %v2789_v20  ;;  %v1067_v54 = vcombine.low %v3189_v63, %v3211_v61 }
  0xde   : > { %4034 = vst [vmem:[#allocation13_spill] sm:$0xff] %v3235_v57  ;;  %v3239_v59 = vrot.slane %v1313_v0, %v3005_v38  ;;  %2369 = vrot.lane.b32.xlu1 %v2368_v39, %s2650_s7  ;;  %v1637_v2 = vcombine.high %v3229_v27, %v4033_v60  ;;  %2339 = vrot.lane.b32.xlu0 %v2338_v34, %s2651_s8 }
  0xdf   : > { %4036 = vst [vmem:[#allocation15_spill] sm:$0xff] %v3245_v7  ;;  %v3260_v48 = vrot.slane %v1237_v31, %v2789_v20  ;;  %v1328_v3 = vcombine.low %v1303_v22, %v1311_v15  ;;  %v3265_v10 = vrot.slane %v486_v58, %v2789_v20  ;;  %v1622_v0 = vcombine.high %v3095_v8, %v3144_v44 }
  0xe0   : > { %4035 = vst [vmem:[#allocation14_spill] sm:$0xff] %v3239_v59  ;;  %v2373_v21 = vpack.i.bf16 %v3160_v33, %v3239_v59  ;;  %v1112_v39 = vcombine.high %v3248_v35, %v3227_v45  ;;  %v2343_v34 = vpack.i.bf16 %v3091_v36, %v684_v18  ;;  %v466_v6 = vcombine.low %v3181_v9, %v3208_v51 }
  0xe1   : > { %v3275_v31 = vrot.slane %v1222_v56, %v2789_v20  ;;  %v4037_v22 = vcombine.low %v2971_v11, %v2974_v16  ;;  %v3286_v15 = vcombine.high %v3166_v41, %v4033_v60  ;;  %v1088_v18 = vcombine.high %v3061_v17, %v3059_v12 }
  0xe2   : > { %2374 = vrot.lane.b32.xlu1 %v2373_v21, %s2648_s5  ;;  %v511_v36 = vcombine.high %v3265_v10, %v3252_v26  ;;  %v1651_v56 = vrot.slane %v1637_v2, %v2789_v20  ;;  %2344 = vrot.lane.b32.xlu0 %v2343_v34, %s2652_s9  ;;  %v2388_v21 = vpack.i.bf16 %v3245_v7, %v3235_v57 }
  0xe3   : > { %v3282_v58 = vrot.slane %v4037_v22, %v3005_v38  ;;  %v1268_v22 = vcombine.low %v3275_v31, %v3260_v48  ;;  %v3299_v59 = vrot.slane %v1328_v3, %v3005_v38  ;;  %v2348_v33 = vpack.i.bf16 %v3104_v55, %v685_v24 }
  0xe4   : > { %v3303_v12 = vrot.slane %v1067_v54, %v3005_v38  ;;  %v487_v17 = vcombine.high %v3057_v30, %v3055_v37  ;;  %v1636_v2 = vrot.slane %v1622_v0, %v2789_v20  ;;  %v1110_v34 = vcombine.high %v1009_v32, %v4033_v60 }
  0xe5   : > { %v3310_v57 = vrot.slane %v1112_v39, %v3005_v38  ;;  %v1221_v7 = vcombine.low %v3007_v47, %v3026_v25  ;;  %v1068_v3 = vcombine.high %v3189_v63, %v3211_v61  ;;  %v3318_v55 = vrot.slane %v466_v6, %v3005_v38 }
  0xe6   : > { %2389 = vrot.lane.b32.xlu1 %v2388_v21, %s2644_s25  ;;  %v4038_v37 = vcombine.high %v2971_v11, %v2974_v16  ;;  %v1102_v32 = vrot.slane %v1088_v18, %v2789_v20  ;;  %v509_v24 = vcombine.high %v3142_v28, %v4033_v60  ;;  %v3330_v47 = vrot.slane %v511_v36, %v3005_v38 }
  0xe7   : > { %v1668_v25 = vcombine.low %v1636_v2, %v1651_v56  ;;  %2349 = vrot.lane.b32.xlu0 %v2348_v33, %s2653_s10  ;;  %v2398_v6 = vpack.i.bf16 %v3303_v12, %v3318_v55  ;;  %v736_v11 = vcombine.high %v3108_v5, %v4033_v60  ;;  %v3338_v16 = vrot.slane %v1268_v22, %v3005_v38 }
  0xe8   : > { %v3324_v30 = vrot.slane %v4038_v37, %v3005_v38  ;;  %v2503_v63 = vpack.i.bf16 %v3166_v41, %v3299_v59  ;;  %v501_v28 = vrot.slane %v487_v17, %v2789_v20  ;;  %v1127_v61 = vcombine.low %v1102_v32, %v1110_v34 }
  0xe9   : > { %v1669_v54 = vcombine.high %v1636_v2, %v1651_v56  ;;  %v2358_v0 = vpack.i.bf16 %v3310_v57, %v3330_v47  ;;  %v467_v33 = vcombine.high %v3181_v9, %v3208_v51  ;;  %v1229_v39 = vrot.slane %v1221_v7, %v2789_v20 }
  0xea   : > { %v1244_v5 = vrot.slane %v3051_v13, %v2789_v20  ;;  %2399 = vrot.lane.b32.xlu1 %v2398_v6, %s2645_s28  ;;  %v3353_v18 = vcombine.high %v3282_v58, %v4033_v60  ;;  %v1269_v36 = vcombine.high %v3275_v31, %v3260_v48  ;;  %v526_v56 = vcombine.low %v501_v28, %v509_v24 }
  0xeb   : > { %2359 = vrot.lane.b32.xlu0 %v2358_v0, %s2648_s5  ;;  %v3359_v21 = vrot.slane %v1068_v3, %v3005_v38  ;;  %v3362_v7 = vrot.slane %v1668_v25, %v3005_v38  ;;  %v1111_v13 = vcombine.low %v3248_v35, %v3227_v45  ;;  %v2363_v9 = vpack.i.bf16 %v3128_v49, %v736_v11 }
  0xec   : > { %v2403_v51 = vpack.i.bf16 %v3114_v19, %v3338_v16  ;;  %v3371_v48 = vcombine.high %v3299_v59, %v4033_v60  ;;  %v3374_v31 = vrot.slane %v1127_v61, %v3005_v38  ;;  %v3383_v45 = vrot.slane %v1669_v54, %v3005_v38 }
  0xed   : > { %v2508_v22 = vpack.i.bf16 %v3362_v7, %v3282_v58  ;;  %v3380_v17 = vcombine.high %v3362_v7, %v4033_v60  ;;  %v1051_v49 = vcombine.low %v3184_v14, %v3177_v1  ;;  %v510_v35 = vcombine.low %v3265_v10, %v3252_v26 }
  0xee   : > { %2404 = vrot.lane.b32.xlu1 %v2403_v51, %s2645_s28  ;;  %v3391_v2 = vrot.slane %v467_v33, %v3005_v38  ;;  %v2518_v34 = vpack.i.bf16 %v3286_v15, %v3371_v48  ;;  %v3396_v3 = vrot.slane %v526_v56, %v3005_v38  ;;  %v1621_v37 = vcombine.low %v3095_v8, %v3144_v44 }
  0xef   : > { %2364 = vrot.lane.b32.xlu0 %v2363_v9, %s2654_s11  ;;  %v2523_v1 = vpack.i.bf16 %v3380_v17, %v3353_v18  ;;  %v2538_v14 = vpack.i.bf16 %v3383_v45, %v3324_v30  ;;  %v3406_v26 = vrot.slane %v1111_v13, %v3005_v38  ;;  %v3411_v32 = vrot.slane %v1269_v36, %v3005_v38 }
  0xf0   : > { %v2408_v10 = vpack.i.bf16 %v3359_v21, %v3391_v2  ;;  %v3415_v8 = vcombine.high %v3324_v30, %v4033_v60  ;;  %v1253_v44 = vcombine.high %v1229_v39, %v1244_v5  ;;  %v3419_v24 = vrot.slane %v3229_v27, %v2789_v20 }
  0xf1   : > { %v2378_v25 = vpack.i.bf16 %v3374_v31, %v3396_v3  ;;  %v737_v6 = vcombine.high %v3140_v23, %v4033_v60  ;;  %v450_v11 = vcombine.low %v3169_v29, %v3151_v43  ;;  %v3428_v28 = vrot.slane %v510_v35, %v3005_v38 }
  0xf2   : > { %2409 = vrot.lane.b32.xlu1 %v2408_v10, %s2646_s30  ;;  %v3433_v61 = vcombine.high %v3383_v45, %v4033_v60  ;;  %v3436_v27 = vrot.slane %v1051_v49, %v3005_v38  ;;  %v1629_v54 = vrot.slane %v1621_v37, %v2789_v20  ;;  %v1252_v23 = vcombine.low %v1229_v39, %v1244_v5 }
  0xf3   : > { %2379 = vrot.lane.b32.xlu0 %v2378_v25, %s2649_s6  ;;  %v2418_v43 = vpack.i.bf16 %v3120_v62, %v3411_v32  ;;  %v1135_v29 = vcombine.high %v3406_v26, %v4033_v60  ;;  %v1267_v33 = vrot.slane %v1253_v44, %v3005_v38  ;;  %v2383_v56 = vpack.i.bf16 %v3147_v46, %v737_v6 }
  0xf4   : > { %v2548_v0 = vpack.i.bf16 %v3433_v61, %v3415_v8  ;;  %v1653_v36 = vcombine.high %v1629_v54, %v3419_v24  ;;  %v4039_v13 = vcombine.high %v2868_v52, %v2871_v53  ;;  %v3454_v5 = vrot.slane %v450_v11, %v3005_v38 }
  0xf5   : > { %v534_v9 = vcombine.high %v3428_v28, %v4033_v60  ;;  %v3461_v51 = vrot.slane %v1252_v23, %v3005_v38  ;;  %v1083_v49 = vcombine.high %v3436_v27, %v4033_v60  ;;  %v4040_v35 = vcombine.low %v2868_v52, %v2871_v53 }
  0xf6   : > { %v245_v39 = vrot.slane %v4039_v13, %v3005_v38  ;;  %2419 = vrot.lane.b32.xlu1 %v2418_v43, %s2646_s30  ;;  %v1312_v10 = vcombine.low %v3201_v4, %v3204_v50  ;;  %v1667_v44 = vrot.slane %v1653_v36, %v3005_v38  ;;  %v4041_v6 = vcombine.high %v2846_v42, %v2839_v40  ;;  %v4042_v36 = vld [vmem:[#allocation8_spill] sm:$0xff] }
  0xf7   : > { %2384 = vrot.lane.b32.xlu0 %v2383_v56, %s2655_s12  ;;  %v2423_v46 = vpack.i.bf16 %v1135_v29, %v534_v9  ;;  %v3469_v37 = vrot.slane %v4040_v35, %v3005_v38  ;;  %v482_v23 = vcombine.high %v3454_v5, %v4033_v60  ;;  %v1284_v4 = vcombine.high %v3461_v51, %v4033_v60  ;;  %v4043_v56 = vld [vmem:[#allocation9_spill] sm:$0xff] }
  0xf8   : > { %v2393_v25 = vpack.i.bf16 %v245_v39, %v1267_v33  ;;  %v1466_v11 = vrot.slane %v4041_v6, %v3005_v38  ;;  %v3487_v50 = vrot.slane %v1312_v10, %v3005_v38  ;;  %v1136_v29 = vcombine.high %v3310_v57, %v4033_v60 }
  0xf9   : > { %v2438_v52 = vpack.i.bf16 %v1083_v49, %v482_v23  ;;  %v262_v53 = vcombine.high %v3469_v37, %v4033_v60  ;;  %v4044_v13 = vcombine.low %v4042_v36, %v4043_v56  ;;  %v263_v35 = vcombine.high %v245_v39, %v4033_v60  ;;  %v3520_v36 = vpop.permute.xlu0 %1812 }
  0xfa   : > { %2424 = vrot.lane.b32.xlu1 %v2423_v46, %s2642_s21  ;;  %v2413_v43 = vpack.i.bf16 %v1667_v44, %v1466_v11  ;;  %v535_v46 = vcombine.high %v3330_v47, %v4033_v60  ;;  %v1285_v10 = vcombine.high %v1267_v33, %v4033_v60  ;;  %v1336_v6 = vcombine.high %v3487_v50, %v4033_v60 }
  0xfb   : > { %2394 = vrot.lane.b32.xlu0 %v2393_v25, %s2644_s25  ;;  %v3495_v9 = vrot.slane %v4044_v13, %v3005_v38  ;;  %v2443_v49 = vpack.i.bf16 %v262_v53, %v1284_v4  ;;  %v264_v47 = vcombine.high %v3114_v19, %v4033_v60  ;;  %v1286_v39 = vcombine.high %v3338_v16, %v4033_v60  ;;  %v4045_v53 = vld [vmem:[#allocation15_spill] sm:$0xff] }
  0xfc   : > { %v2428_v25 = vpack.i.bf16 %v1136_v29, %v535_v46  ;;  %v2453_v23 = vpack.i.bf16 %v263_v35, %v1285_v10  ;;  %v1652_v33 = vcombine.low %v1629_v54, %v3419_v24  ;;  %v1084_v4 = vcombine.high %v4045_v53, %v4033_v60  ;;  %v3541_v35 = vpop.permute.xlu1 %1804 }
  0xfd   : > { %v314_v57 = vcombine.high %v3495_v9, %v4033_v60  ;;  %v2473_v56 = vpack.i.bf16 %v264_v47, %v1286_v39  ;;  %v1086_v19 = vcombine.high %v3359_v21, %v4033_v60  ;;  %v1085_v54 = vcombine.high %v3303_v12, %v4033_v60  ;;  %v4049_v39 = vld [vmem:[#allocation14_spill] sm:$0xff] }
  0xfe   : > { %2439 = vrot.lane.b32.xlu1 %v2438_v52, %s2651_s8  ;;  %v3525_v16 = vrot.slane %v1652_v33, %v3005_v38  ;;  %v4047_v13 = vcombine.low %v2846_v42, %v2839_v40  ;;  %v484_v21 = vcombine.high %v3318_v55, %v4033_v60  ;;  %v1484_v12 = vcombine.high %v1466_v11, %v4033_v60 }
  0xff   : > { %2414 = vrot.lane.b32.xlu0 %v2413_v43, %s2644_s25  ;;  %v2433_v52 = vpack.i.bf16 %v314_v57, %v1336_v6  ;;  %v4046_v43 = vld [vmem:[#allocation13_spill] sm:$0xff]  ;;  %v1137_v6 = vcombine.high %v3374_v31, %v4033_v60  ;;  %v1337_v33 = vcombine.high %v4049_v39, %v4033_v60  ;;  %v1823_v48 = vcombine.high %v3541_v35, %v3520_v36 }
 0x100   : > { %v483_v29 = vcombine.high %v4046_v43, %v4033_v60  ;;  %v3533_v46 = vrot.slane %v4047_v13, %v3005_v38  ;;  %v2458_v40 = vpack.i.bf16 %v1085_v54, %v484_v21  ;;  %v1684_v57 = vcombine.high %v3525_v16, %v4033_v60  ;;  %v1606_v11 = vpop.permute.xlu1 %1605  ;;  %v4051_v43 = vld [vmem:[#allocation5_spill] sm:$0xff] }
 0x101   : > { %v2488_v21 = vpack.i.bf16 %v3406_v26, %v3428_v28  ;;  %v1822_v26 = vcombine.low %v3541_v35, %v3520_v36  ;;  %v1837_v36 = vrot.slane %v1823_v48, %v2789_v20 }
 0x102   : > { %2444 = vrot.lane.b32.xlu1 %v2443_v49, %s2651_s8  ;;  %v2448_v24 = vpack.i.bf16 %v1084_v4, %v483_v29  ;;  %v485_v49 = vcombine.high %v3391_v2, %v4033_v60  ;;  %v1483_v42 = vcombine.high %v3533_v46, %v4033_v60  ;;  %v1614_v2 = vpop.permute.xlu0 %1613  ;;  %v4050_v4 = vld [vmem:[#allocation6_spill] sm:$0xff] }
 0x103   : > { %2429 = vrot.lane.b32.xlu0 %v2428_v25, %s2654_s11  ;;  %v1685_v25 = vcombine.high %v1667_v44, %v4033_v60  ;;  %v4048_v44 = vld [vmem:[#allocation12_spill] sm:$0xff]  ;;  %v1688_v53 = vcombine.low %v1606_v11, %v1614_v2  ;;  %v1487_v29 = vcombine.low %v4051_v43, %v4050_v4  ;;  %v1488_v59 = vcombine.high %v4051_v43, %v4050_v4 }
 0x104   : > { %v2478_v10 = vpack.i.bf16 %v1086_v19, %v485_v49  ;;  %v315_v47 = vcombine.high %v4048_v44, %v4033_v60  ;;  %v4052_v49 = vld [vmem:[#allocation7_spill] sm:$0xff] }
 0x105   : > { %v2483_v55 = vpack.i.bf16 %v1685_v25, %v1484_v12  ;;  %v1495_v13 = vrot.slane %v1487_v29, %v2789_v20  ;;  %v1287_v12 = vcombine.high %v3411_v32, %v4033_v60 }
 0x106   : > { %2454 = vrot.lane.b32.xlu1 %v2453_v23, %s2652_s9  ;;  %v2463_v23 = vpack.i.bf16 %v1684_v57, %v1483_v42  ;;  %v1610_v31 = vpop.permute.xlu0 %1609  ;;  %v2468_v19 = vpack.i.bf16 %v315_v47, %v1337_v33  ;;  %v2513_v42 = vpack.i.bf16 %v3495_v9, %v3487_v50  ;;  %v1830_v50 = vrot.slane %v1822_v26, %v2789_v20 }
 0x107   : > { %2434 = vrot.lane.b32.xlu0 %v2433_v52, %s2642_s21  ;;  %v536_v52 = vcombine.high %v3396_v3, %v4033_v60  ;;  %v1710_v54 = vrot.slane %v1610_v31, %v2789_v20  ;;  %v1509_v3 = vrot.slane %v4052_v49, %v2789_v20  ;;  %v1711_v39 = vcombine.high %v1610_v31, %v4033_v60 }
 0x109   : > { %v1511_v57 = vcombine.low %v1495_v13, %v1509_v3 }
 0x10a   : > { %2474 = vrot.lane.b32.xlu1 %v2473_v56, %s2653_s10  ;;  %v2493_v56 = vpack.i.bf16 %v1137_v6, %v536_v52  ;;  %v1815_v4 = vpop.permute.xlu0 %1814 }
 0x10b   : > { %2449 = vrot.lane.b32.xlu0 %v2448_v24, %s2652_s9  ;;  %v1696_v24 = vrot.slane %v1688_v53, %v2789_v20 }
 0x10d   : > { %v1713_v25 = vcombine.high %v1696_v24, %v1710_v54  ;;  %v1712_v28 = vcombine.low %v1696_v24, %v1710_v54 }
 0x10e   : > { %2479 = vrot.lane.b32.xlu1 %v2478_v10, %s2650_s7  ;;  %v265_v10 = vcombine.high %v3120_v62, %v4033_v60 }
 0x10f   : > { %2459 = vrot.lane.b32.xlu0 %v2458_v40, %s2653_s10  ;;  %v1512_v40 = vcombine.high %v1495_v13, %v1509_v3  ;;  %v1727_v32 = vrot.slane %v1713_v25, %v3005_v38  ;;  %v1720_v6 = vrot.slane %v1712_v28, %v3005_v38 }
 0x110   : > { %v2498_v62 = vpack.i.bf16 %v265_v10, %v1287_v12 }
 0x111   : > { %v1526_v41 = vrot.slane %v1512_v40, %v3005_v38  ;;  %v1736_v18 = vcombine.high %v1720_v6, %v4033_v60  ;;  %v1737_v45 = vcombine.high %v1727_v32, %v4033_v60 }
 0x112   : > { %2484 = vrot.lane.b32.xlu1 %v2483_v55, %s2652_s9  ;;  %v1689_v55 = vcombine.high %v1606_v11, %v1614_v2  ;;  %v1502_v2 = vrot.slane %v1488_v59, %v2789_v20  ;;  %v1510_v11 = vcombine.high %v4052_v49, %v4033_v60 }
 0x113   : > { %2464 = vrot.lane.b32.xlu0 %v2463_v23, %s2651_s8  ;;  %v1519_v23 = vrot.slane %v1511_v57, %v3005_v38  ;;  %v2533_v44 = vpack.i.bf16 %v1727_v32, %v1526_v41  ;;  %v1536_v30 = vcombine.high %v1526_v41, %v4033_v60 }
 0x114   : > { %v1703_v47 = vrot.slane %v1689_v55, %v2789_v20  ;;  %v1527_v7 = vcombine.low %v1502_v2, %v1510_v11 }
 0x115   : > { %v1535_v52 = vcombine.high %v1519_v23, %v4033_v60  ;;  %v2543_v13 = vpack.i.bf16 %v1737_v45, %v1536_v30 }
 0x116   : > { %2494 = vrot.lane.b32.xlu1 %v2493_v56, %s2655_s12  ;;  %v1728_v17 = vcombine.low %v1703_v47, %v1711_v39  ;;  %v1534_v15 = vrot.slane %v1527_v7, %v3005_v38  ;;  %v192_v39 = vld [vmem:[%s4002_s2] sm:$0x3f] }
 0x117   : > { %2469 = vrot.lane.b32.xlu0 %v2468_v19, %s2654_s11  ;;  %v2528_v53 = vpack.i.bf16 %v1736_v18, %v1535_v52 }
 0x118   : > { %v1735_v29 = vrot.slane %v1728_v17, %v3005_v38  ;;  %v1537_v40 = vcombine.high %v1534_v15, %v4033_v60 }
 0x11a   : > { %2504 = vrot.lane.b32.xlu1 %v2503_v63, %s2649_s6  ;;  %v1809_v63 = vpop.permute.xlu1 %1808  ;;  %v2553_v54 = vpack.i.bf16 %v1735_v29, %v1534_v15 }
 0x11b   : > { %2489 = vrot.lane.b32.xlu0 %v2488_v21, %s2647_s4  ;;  %v1845_v9 = vrot.slane %v1809_v63, %v2789_v20  ;;  %v2558_v21 = vpack.i.bf16 %v1720_v6, %v1519_v23 }
 0x11d   : > { %v1853_v33 = vcombine.low %v1830_v50, %v1845_v9 }
 0x11e   : > { %2514 = vrot.lane.b32.xlu1 %v2513_v42, %s2647_s4  ;;  %v1807_v58 = vpop.permute.xlu1 %1806  ;;  %v1738_v42 = vcombine.high %v1735_v29, %v4033_v60 }
 0x11f   : > { %2499 = vrot.lane.b32.xlu0 %v2498_v62, %s2650_s7  ;;  %v1889_v43 = vcombine.low %v1807_v58, %v1815_v4  ;;  %v1890_v61 = vcombine.high %v1807_v58, %v1815_v4 }
 0x120   : > { %v2563_v62 = vpack.i.bf16 %v1738_v42, %v1537_v40 }
 0x122   : > { %2524 = vrot.lane.b32.xlu1 %v2523_v1, %s2653_s10  ;;  %v3616_v1 = vrot.slane %v1853_v33, %v3005_v38  ;;  %v1811_v56 = vpop.permute.xlu1 %1810  ;;  %v2656_v33 = vmov 0  }
 0x123   : > { %2509 = vrot.lane.b32.xlu0 %v2508_v22, %s2645_s28  ;;  %v1854_v22 = vcombine.high %v1830_v50, %v1845_v9  ;;  %v1911_v24 = vrot.slane %v1811_v56, %v2789_v20  ;;  %v1912_v55 = vcombine.high %v1811_v56, %v4033_v60  ;;  %2568 = vset.pattern.permute.xlu1 %v2656_v33 }
 0x124   : > { %v1885_v19 = vcombine.high %v3616_v1, %v4033_v60  ;;  %2569 = vset.pattern.permute.xlu0 %v2656_v33 }
 0x125   : > { %v1868_v31 = vrot.slane %v1854_v22, %v3005_v38 }
 0x126   : > { %2534 = vrot.lane.b32.xlu1 %v2533_v44, %s2648_s5 }
 0x127   : > { %2519 = vrot.lane.b32.xlu0 %v2518_v34, %s2655_s12  ;;  %v1838_v34 = vcombine.high %v1809_v63, %v4033_v60  ;;  %v1886_v25 = vcombine.high %v1868_v31, %v4033_v60  ;;  %v1904_v63 = vrot.slane %v1890_v61, %v2789_v20 }
 0x129   : > { %v1852_v35 = vrot.slane %v1838_v34, %v2789_v20  ;;  %v1929_v23 = vcombine.low %v1904_v63, %v1912_v55 }
 0x12a   : > { %2539 = vrot.lane.b32.xlu1 %v2538_v14, %s2646_s30  ;;  %v1897_v14 = vrot.slane %v1889_v43, %v2789_v20 }
 0x12b   : > { %2529 = vrot.lane.b32.xlu0 %v2528_v53, %s2642_s21  ;;  %v1869_v3 = vcombine.low %v1837_v36, %v1852_v35  ;;  %v1870_v28 = vcombine.high %v1837_v36, %v1852_v35  ;;  %v1936_v11 = vrot.slane %v1929_v23, %v3005_v38  ;;  %v4054_v53 = vld [vmem:[#allocation11_spill] sm:$0xff] }
 0x12c   : > { %v1913_v49 = vcombine.low %v1897_v14, %v1911_v24 }
 0x12d   : > { %v1877_v12 = vrot.slane %v1869_v3, %v3005_v38  ;;  %v1884_v8 = vrot.slane %v1870_v28, %v3005_v38  ;;  %v1939_v58 = vcombine.high %v1936_v11, %v4033_v60 }
 0x12e   : > { %1945 = vrot.lane.b32.xlu1 %v1868_v31, %s2644_s25  ;;  %v1921_v10 = vrot.slane %v1913_v49, %v3005_v38 }
 0x12f   : > { %1941 = vrot.lane.b32.xlu0 %v1885_v19, %s2651_s8  ;;  %v1887_v32 = vcombine.high %v1877_v12, %v4033_v60  ;;  %v1888_v59 = vcombine.high %v1884_v8, %v4033_v60 }
 0x130   : > { %v1937_v26 = vcombine.high %v1921_v10, %v4033_v60  ;;  %v2310_v50 = vpop.permute.xlu0 %2309 }
 0x131   : > { %v2312_v15 = vunpack.i.h.bf16 %v2310_v50  ;;  %v2311_v48 = vunpack.i.l.bf16 %v2310_v50 }
 0x132   : > { %2554 = vrot.lane.b32.xlu1 %v2553_v54, %s2649_s6  ;;  %v2315_v57 = vpop.permute.xlu1 %2314 }
 0x133   : > { %2544 = vrot.lane.b32.xlu0 %v2543_v13, %s2654_s11  ;;  %v2316_v56 = vunpack.i.l.bf16 %v2315_v57 }
 0x136   : > { %2559 = vrot.lane.b32.xlu1 %v2558_v21, %s2647_s4  ;;  %v3660_v41 = vpop.permute.xlu1 %2324 }
 0x137   : > { %2549 = vrot.lane.b32.xlu0 %v2548_v0, %s2650_s7  ;;  %v1914_v0 = vcombine.high %v1897_v14, %v1911_v24  ;;  %v2327_v3 = vunpack.i.h.bf16 %v3660_v41  ;;  %v2326_v21 = vunpack.i.l.bf16 %v3660_v41 }
 0x139   : > { %v1928_v9 = vrot.slane %v1914_v0, %v3005_v38  ;;  %v4053_v38 = vld [vmem:[#allocation10_spill] sm:$0xff] }
 0x13a   : > { %1953 = vrot.lane.b32.xlu1 %v1877_v12, %s2645_s28 }
 0x13b   : > { %1949 = vrot.lane.b32.xlu0 %v1886_v25, %s2652_s9  ;;  %v1938_v2 = vcombine.high %v1928_v9, %v4033_v60  ;;  %v2317_v60 = vunpack.i.h.bf16 %v2315_v57 }
 0x13e   : > { %1973 = vrot.lane.b32.xlu1 %v1937_v26, %s2642_s21 }
 0x13f   : > { %2564 = vrot.lane.b32.xlu0 %v2563_v62, %s2655_s12 }
 0x142   : > { %1961 = vrot.lane.b32.xlu1 %v1884_v8, %s2646_s30 }
 0x143   : > { %1957 = vrot.lane.b32.xlu0 %v1887_v32, %s2653_s10 }
 0x146   : > { %1965 = vrot.lane.b32.xlu1 %v1888_v59, %s2650_s7 }
 0x147   : > { %1977 = vrot.lane.b32.xlu0 %v1928_v9, %s2648_s5 }
 0x148   : > { %v3668_v6 = vpop.permute.xlu1 %2334  ;;  %v3670_v44 = vpop.permute.xlu0 %2319 }
 0x149   : > { %v2337_v26 = vunpack.i.h.bf16 %v3668_v6  ;;  %v2336_v28 = vunpack.i.l.bf16 %v3668_v6  ;;  %v2322_v6 = vunpack.i.h.bf16 %v3670_v44  ;;  %v2321_v23 = vunpack.i.l.bf16 %v3670_v44 }
 0x14a   : > { %1969 = vrot.lane.b32.xlu1 %v1921_v10, %s2647_s4 }
 0x14b   : > { %1981 = vrot.lane.b32.xlu0 %v1938_v2, %s2654_s11 }
 0x14c   : > { %v3675_v20 = vpop.permute.xlu1 %2354  ;;  %v3678_v47 = vpop.permute.xlu0 %2329 }
 0x14d   : > { %v2357_v61 = vunpack.i.h.bf16 %v3675_v20  ;;  %v2356_v0 = vunpack.i.l.bf16 %v3675_v20 }
 0x14e   : > { %2068 = vperm.xlu1 %2568, %v192_v39   ;;  %v2332_v39 = vunpack.i.h.bf16 %v3678_v47 }
 0x14f   : > { %1985 = vrot.lane.b32.xlu0 %v1936_v11, %s2649_s6 }
 0x150   : > { %v2370_v52 = vpop.permute.xlu1 %2369  ;;  %v2340_v18 = vpop.permute.xlu0 %2339 }
 0x151   : > { %v2342_v7 = vunpack.i.h.bf16 %v2340_v18  ;;  %v2341_v22 = vunpack.i.l.bf16 %v2340_v18  ;;  %v2372_v10 = vunpack.i.h.bf16 %v2370_v52  ;;  %v2371_v12 = vunpack.i.l.bf16 %v2370_v52 }
 0x152   : > { %v799_v18 = vsel %vm387_vm11, %v2356_v0, %v2321_v23 }
 0x153   : > { %1989 = vrot.lane.b32.xlu0 %v1939_v58, %s2655_s12  ;;  %v989_v17 = vsel %vm369_vm2, %v4053_v38, %v2342_v7  ;;  %v790_v4 = vsel %vm369_vm2, %v4054_v53, %v2341_v22  ;;  %v998_v58 = vsel %vm387_vm11, %v2357_v61, %v2322_v6  ;;  %v2331_v7 = vunpack.i.l.bf16 %v3678_v47 }
 0x154   : > { %v3690_v43 = vpop.permute.xlu1 %2374  ;;  %v2345_v34 = vpop.permute.xlu0 %2344  ;;  %v791_v19 = vsel %vm371_vm3, %v790_v4, %v2311_v48  ;;  %v990_v30 = vsel %vm371_vm3, %v989_v17, %v2312_v15 }
 0x155   : > { %v2347_v29 = vunpack.i.h.bf16 %v2345_v34  ;;  %v2346_v31 = vunpack.i.l.bf16 %v2345_v34 }
 0x157   : > { %v792_v45 = vsel %vm4020_vm4, %v791_v19, %v2346_v31  ;;  %v991_v14 = vsel %vm4020_vm4, %v990_v30, %v2347_v29 }
 0x158   : > { %v3696_v24 = vpop.permute.xlu1 %2389  ;;  %v793_v35 = vsel %vm375_vm5, %v792_v45, %v2316_v56  ;;  %v992_v54 = vsel %vm375_vm5, %v991_v14, %v2317_v60 }
 0x159   : > { %v2350_v36 = vpop.permute.xlu0 %2349 }
 0x15a   : > { %v2352_v13 = vunpack.i.h.bf16 %v2350_v36  ;;  %v2351_v49 = vunpack.i.l.bf16 %v2350_v36 }
 0x15c   : > { %v794_v25 = vsel %vm377_vm6, %v793_v35, %v2351_v49  ;;  %v993_v40 = vsel %vm377_vm6, %v992_v54, %v2352_v13  ;;  %v3704_v42 = vpop.permute.xlu1 %2399 }
 0x15d   : > { %v795_v62 = vsel %vm379_vm7, %v794_v25, %v2326_v21  ;;  %v994_v57 = vsel %vm379_vm7, %v993_v40, %v2327_v3  ;;  %v3710_v8 = vpop.permute.xlu0 %2359  ;;  %v2377_v40 = vunpack.i.h.bf16 %v3690_v43 }
 0x15e   : > { %v796_v32 = vsel %vm381_vm8, %v795_v62, %v2371_v12  ;;  %v995_v41 = vsel %vm381_vm8, %v994_v57, %v2372_v10  ;;  %v2362_v6 = vunpack.i.h.bf16 %v3710_v8  ;;  %v2361_v23 = vunpack.i.l.bf16 %v3710_v8 }
 0x15f   : > { %v996_v59 = vsel %vm383_vm9, %v995_v41, %v2337_v26  ;;  %v797_v63 = vsel %vm383_vm9, %v796_v32, %v2336_v28  ;;  %v2376_v26 = vunpack.i.l.bf16 %v3690_v43  ;;  %v2392_v28 = vunpack.i.h.bf16 %v3696_v24 }
 0x160   : > { %v3718_v55 = vpop.permute.xlu1 %2404  ;;  %v3721_v50 = vsel %vm385_vm10, %v797_v63, %v2356_v0  ;;  %v997_v9 = vsel %vm385_vm10, %v996_v59, %v2357_v61  ;;  %v2391_v59 = vunpack.i.l.bf16 %v3696_v24  ;;  %v2402_v63 = vunpack.i.h.bf16 %v3704_v42 }
 0x161   : > { %v2365_v2 = vpop.permute.xlu0 %2364  ;;  %v2013_v20 = vrot.slane %v3721_v50, 2  ;;  %v2019_v11 = vrot.slane %v997_v9, 7  ;;  %v2401_v9 = vunpack.i.l.bf16 %v3704_v42 }
 0x162   : > { %v2367_v33 = vunpack.i.h.bf16 %v2365_v2  ;;  %v2366_v52 = vunpack.i.l.bf16 %v2365_v2  ;;  %v2407_v2 = vunpack.i.h.bf16 %v3718_v55 }
 0x163   : > { %v3734_v22 = vsel %vm2052_vm13, %v2013_v20, %v2019_v11 }
 0x164   : > { %v999_v44 = vsel %vm389_vm12, %v998_v58, %v2367_v33  ;;  %v800_v38 = vsel %vm389_vm12, %v799_v18, %v2366_v52  ;;  %v3738_v17 = vpop.permute.xlu1 %2409 }
 0x165   : > { %v3740_v53 = vpop.permute.xlu0 %2379  ;;  %v1000_v4 = vsel %vm391_vm14, %v999_v44, %v2332_v39  ;;  %v801_v15 = vsel %vm391_vm14, %v800_v38, %v2331_v7  ;;  %v2406_v39 = vunpack.i.l.bf16 %v3718_v55  ;;  %v2411_v55 = vunpack.i.l.bf16 %v3738_v17 }
 0x166   : > { %v2382_v44 = vunpack.i.h.bf16 %v3740_v53 }
 0x168   : > { %v3744_v48 = vpop.permute.xlu1 %2419 }
 0x169   : > { %v2385_v47 = vpop.permute.xlu0 %2384 }
 0x16a   : > { %v2387_v34 = vunpack.i.h.bf16 %v2385_v47  ;;  %v2386_v29 = vunpack.i.l.bf16 %v2385_v47 }
 0x16c   : > { %v1001_v31 = vsel %vm393_vm15, %v1000_v4, %v2387_v34  ;;  %v3747_v60 = vpop.permute.xlu1 %2424  ;;  %v3750_v56 = vsel %vm393_vm15, %v801_v15, %v2386_v29 }
 0x16d   : > { %v2020_v19 = vrot.slane %v1001_v31, 7  ;;  %v3752_v30 = vpop.permute.xlu0 %2394  ;;  %v2014_v45 = vrot.slane %v3750_v56, 2  ;;  %v2427_v38 = vunpack.i.h.bf16 %v3747_v60 }
 0x16e   : > { %v2397_v31 = vunpack.i.h.bf16 %v3752_v30 }
 0x16f   : > { %v3758_v14 = vsel %vm2052_vm13, %v2014_v45, %v2020_v19  ;;  %v2396_v19 = vunpack.i.l.bf16 %v3752_v30  ;;  %vm2047_vm13 = vcmask 1042432  }
 0x170   : > { %v2440_v36 = vpop.permute.xlu1 %2439 }
 0x171   : > { %v3760_v35 = vpop.permute.xlu0 %2414  ;;  %v2442_v10 = vunpack.i.h.bf16 %v2440_v36  ;;  %v2441_v12 = vunpack.i.l.bf16 %v2440_v36 }
 0x173   : > { %v1190_v57 = vsel %vm369_vm2, %v3436_v27, %v2442_v10  ;;  %v589_v61 = vsel %vm369_vm2, %v3454_v5, %v2441_v12  ;;  %v2412_v5 = vunpack.i.h.bf16 %v3738_v17  ;;  %v2381_v10 = vunpack.i.l.bf16 %v3740_v53 }
 0x174   : > { %v2445_v54 = vpop.permute.xlu1 %2444  ;;  %v590_v33 = vsel %vm371_vm3, %v589_v61, %v2391_v59  ;;  %v1191_v24 = vsel %vm371_vm3, %v1190_v57, %v2392_v28  ;;  %v2426_v12 = vunpack.i.l.bf16 %v3747_v60  ;;  %v2422_v61 = vunpack.i.h.bf16 %v3744_v48 }
 0x175   : > { %v3762_v13 = vpop.permute.xlu0 %2429  ;;  %v2447_v11 = vunpack.i.h.bf16 %v2445_v54  ;;  %v2446_v27 = vunpack.i.l.bf16 %v2445_v54 }
 0x176   : > { %v2432_v4 = vunpack.i.h.bf16 %v3762_v13  ;;  %v2431_v30 = vunpack.i.l.bf16 %v3762_v13 }
 0x177   : > { %v370_v15 = vsel %vm369_vm2, %v3469_v37, %v2447_v11  ;;  %v1391_v47 = vsel %vm369_vm2, %v3461_v51, %v2446_v27 }
 0x178   : > { %v2455_v49 = vpop.permute.xlu1 %2454  ;;  %v372_v28 = vsel %vm371_vm3, %v370_v15, %v2397_v31  ;;  %v1392_v57 = vsel %vm371_vm3, %v1391_v47, %v2396_v19 }
 0x179   : > { %v3764_v3 = vpop.permute.xlu0 %2434  ;;  %v2457_v34 = vunpack.i.h.bf16 %v2455_v49  ;;  %v2456_v29 = vunpack.i.l.bf16 %v2455_v49  ;;  %v1199_v49 = vsel %vm387_vm11, %v2427_v38, %v2362_v6  ;;  %v598_v6 = vsel %vm387_vm11, %v2426_v12, %v2361_v23 }
 0x17a   : > { %v1200_v53 = vsel %vm389_vm12, %v1199_v49, %v2432_v4 }
 0x17b   : > { %v374_v60 = vsel %vm4020_vm4, %v372_v28, %v2457_v34 }
 0x17c   : > { %v3766_v21 = vpop.permute.xlu1 %2474 }
 0x17d   : > { %v2450_v25 = vpop.permute.xlu0 %2449 }
 0x17e   : > { %v2452_v0 = vunpack.i.h.bf16 %v2450_v25  ;;  %v2451_v32 = vunpack.i.l.bf16 %v2450_v25 }
 0x180   : > { %v3771_v62 = vpop.permute.xlu1 %2479  ;;  %v1192_v42 = vsel %vm4020_vm4, %v1191_v24, %v2452_v0  ;;  %v591_v18 = vsel %vm4020_vm4, %v590_v33, %v2451_v32  ;;  %v1393_v0 = vsel %vm4020_vm4, %v1392_v57, %v2456_v29  ;;  %v2477_v32 = vunpack.i.h.bf16 %v3766_v21 }
 0x181   : > { %v2460_v41 = vpop.permute.xlu0 %2459  ;;  %v592_v36 = vsel %vm375_vm5, %v591_v18, %v2401_v9  ;;  %v1193_v17 = vsel %vm375_vm5, %v1192_v42, %v2402_v63  ;;  %v2421_v9 = vunpack.i.l.bf16 %v3744_v48  ;;  %v2482_v11 = vunpack.i.h.bf16 %v3771_v62 }
 0x182   : > { %v2462_v58 = vunpack.i.h.bf16 %v2460_v41  ;;  %v2461_v8 = vunpack.i.l.bf16 %v2460_v41  ;;  %v2476_v41 = vunpack.i.l.bf16 %v3766_v21  ;;  %v2481_v27 = vunpack.i.l.bf16 %v3771_v62 }
 0x183   : > { %v599_v24 = vsel %vm389_vm12, %v598_v6, %v2431_v30  ;;  %v1201_v21 = vsel %vm391_vm14, %v1200_v53, %v2382_v44  ;;  %vm2055_vm4 = vcmask 1043456   ;;  %v2437_v44 = vunpack.i.h.bf16 %v3764_v3 }
 0x184   : > { %v3787_v52 = vpop.permute.xlu1 %2484  ;;  %v593_v37 = vsel %vm377_vm6, %v592_v36, %v2461_v8  ;;  %v1194_v51 = vsel %vm377_vm6, %v1193_v17, %v2462_v58  ;;  %v1394_v58 = vsel %vm375_vm5, %v1393_v0, %v2406_v39  ;;  %v2436_v17 = vunpack.i.l.bf16 %v3764_v3 }
 0x185   : > { %v3791_v7 = vpop.permute.xlu0 %2464  ;;  %v594_v59 = vsel %vm379_vm7, %v593_v37, %v2411_v55  ;;  %v1195_v13 = vsel %vm379_vm7, %v1194_v51, %v2412_v5  ;;  %v376_v5 = vsel %vm375_vm5, %v374_v60, %v2407_v2  ;;  %v1395_v55 = vsel %vm377_vm6, %v1394_v58, %v2476_v41 }
 0x186   : > { %v1196_v8 = vsel %vm381_vm8, %v1195_v13, %v2482_v11  ;;  %v595_v48 = vsel %vm381_vm8, %v594_v59, %v2481_v27  ;;  %v378_v23 = vsel %vm377_vm6, %v376_v5, %v2477_v32  ;;  %v1396_v49 = vsel %vm379_vm7, %v1395_v55, %v2421_v9 }
 0x187   : > { %v380_v51 = vsel %vm379_vm7, %v378_v23, %v2422_v61  ;;  %v600_v61 = vsel %vm391_vm14, %v599_v24, %v2381_v10  ;;  %v388_v11 = vsel %vm387_vm11, %v2437_v44, %v2377_v40  ;;  %v1400_v10 = vsel %vm387_vm11, %v2436_v17, %v2376_v26 }
 0x188   : > { %v3805_v54 = vpop.permute.xlu1 %2494  ;;  %v2467_v56 = vunpack.i.h.bf16 %v3791_v7 }
 0x189   : > { %v3811_v25 = vpop.permute.xlu0 %2469  ;;  %v2497_v2 = vunpack.i.h.bf16 %v3805_v54  ;;  %v2496_v37 = vunpack.i.l.bf16 %v3805_v54 }
 0x18a   : > { %v2472_v30 = vunpack.i.h.bf16 %v3811_v25  ;;  %v2471_v28 = vunpack.i.l.bf16 %v3811_v25 }
 0x18b   : > { %v1202_v32 = vsel %vm393_vm15, %v1201_v21, %v2497_v2  ;;  %v601_v27 = vsel %vm393_vm15, %v600_v61, %v2496_v37  ;;  %v1791_v37 = vsel %vm369_vm2, %v3525_v16, %v2467_v56 }
 0x18c   : > { %v3825_v63 = vpop.permute.xlu1 %2504  ;;  %v390_v24 = vsel %vm389_vm12, %v388_v11, %v2472_v30  ;;  %v1401_v21 = vsel %vm389_vm12, %v1400_v10, %v2471_v28  ;;  %v2008_v58 = vrot.slane %v601_v27, 5 }
 0x18d   : > { %v2490_v33 = vpop.permute.xlu0 %2489  ;;  %v2507_v59 = vunpack.i.h.bf16 %v3825_v63  ;;  %v2506_v13 = vunpack.i.l.bf16 %v3825_v63 }
 0x18e   : > { %v2492_v42 = vunpack.i.h.bf16 %v2490_v33  ;;  %v2491_v18 = vunpack.i.l.bf16 %v2490_v33 }
 0x18f   : > { %v392_v50 = vsel %vm391_vm14, %v390_v24, %v2507_v59 }
 0x190   : > { %v596_v62 = vsel %vm383_vm9, %v595_v48, %v2491_v18  ;;  %v1197_v4 = vsel %vm383_vm9, %v1196_v8, %v2492_v42  ;;  %v2515_v15 = vpop.permute.xlu1 %2514  ;;  %v2026_v18 = vrot.slane %v1202_v32, 4 }
 0x191   : > { %v2500_v47 = vpop.permute.xlu0 %2499  ;;  %v2517_v39 = vunpack.i.h.bf16 %v2515_v15  ;;  %v2516_v34 = vunpack.i.l.bf16 %v2515_v15  ;;  %v597_v29 = vsel %vm385_vm10, %v596_v62, %v2426_v12  ;;  %v1198_v31 = vsel %vm385_vm10, %v1197_v4, %v2427_v38 }
 0x192   : > { %v2502_v19 = vunpack.i.h.bf16 %v2500_v47  ;;  %v2501_v36 = vunpack.i.l.bf16 %v2500_v47  ;;  %v2007_v38 = vrot.slane %v597_v29, 5  ;;  %v2025_v60 = vrot.slane %v1198_v31, 4 }
 0x194   : > { %v382_v57 = vsel %vm381_vm8, %v380_v51, %v2502_v19  ;;  %v1397_v12 = vsel %vm381_vm8, %v1396_v49, %v2501_v36  ;;  %v3853_v53 = vpop.permute.xlu1 %2524  ;;  %v2056_v40 = vsel %vm2055_vm4, %v3734_v22, %v2025_v60  ;;  %v2466_v19 = vunpack.i.l.bf16 %v3791_v7 }
 0x195   : > { %v384_v3 = vsel %vm383_vm9, %v382_v57, %v2517_v39  ;;  %v1398_v54 = vsel %vm383_vm9, %v1397_v12, %v2516_v34  ;;  %v3857_v0 = vpop.permute.xlu0 %2509  ;;  %v2417_v51 = vunpack.i.h.bf16 %v3760_v35  ;;  %v2486_v12 = vunpack.i.l.bf16 %v3787_v52 }
 0x196   : > { %v386_v25 = vsel %vm385_vm10, %v384_v3, %v2437_v44  ;;  %v3863_v41 = vsel %vm385_vm10, %v1398_v54, %v2436_v17  ;;  %v2057_v44 = vsel %vm2055_vm4, %v3758_v14, %v2026_v18  ;;  %v1590_v14 = vsel %vm369_vm2, %v3533_v46, %v2466_v19 }
 0x197   : > { %v2031_v9 = vrot.slane %v3863_v41, 1  ;;  %v2048_v6 = vsel %vm2047_vm13, %v386_v25, %v2007_v38  ;;  %v2416_v17 = vunpack.i.l.bf16 %v3760_v35  ;;  %v2511_v28 = vunpack.i.l.bf16 %v3857_v0  ;;  %v191_v41 = vld [vmem:[%s4001_s1] sm:$0x3f] }
 0x198   : > { %v3876_v33 = vpop.permute.xlu1 %2534  ;;  %v2050_v63 = vsel %vm1404_vm1, %v2048_v6, %v2013_v20  ;;  %v1402_v20 = vsel %vm391_vm14, %v1401_v21, %v2506_v13  ;;  %v1792_v7 = vsel %vm371_vm3, %v1791_v37, %v2417_v51  ;;  %v2512_v38 = vunpack.i.h.bf16 %v3857_v0 }
 0x199   : > { %v2520_v42 = vpop.permute.xlu0 %2519  ;;  %v2058_v26 = vsel %vm803_vm0, %v2056_v40, %v2031_v9  ;;  %v1591_v30 = vsel %vm371_vm3, %v1590_v14, %v2416_v17  ;;  %v2487_v46 = vunpack.i.h.bf16 %v3787_v52  ;;  %v2526_v16 = vunpack.i.l.bf16 %v3853_v53 }
 0x19a   : > { %v2522_v43 = vunpack.i.h.bf16 %v2520_v42  ;;  %v2521_v5 = vunpack.i.l.bf16 %v2520_v42  ;;  %v2237_v8 = vpack.c.bf16 %v2058_v26, %v2050_v63  ;;  %v2527_v61 = vunpack.i.h.bf16 %v3853_v53 }
 0x19b   : > { %v2536_v27 = vunpack.i.l.bf16 %v3876_v33  ;;  %vm2063_vm4 = vcmask 1044480  }
 0x19c   : > { %v3890_v48 = vpop.permute.xlu1 %2539  ;;  %v394_v23 = vsel %vm393_vm15, %v392_v50, %v2522_v43  ;;  %v3894_v55 = vsel %vm393_vm15, %v1402_v20, %v2521_v5  ;;  %v2537_v50 = vunpack.i.h.bf16 %v3876_v33 }
 0x19d   : > { %v3896_v22 = vpop.permute.xlu0 %2529  ;;  %v2032_v62 = vrot.slane %v3894_v55, 1  ;;  %v2049_v4 = vsel %vm2047_vm13, %v394_v23, %v2008_v58  ;;  %v2541_v59 = vunpack.i.l.bf16 %v3890_v48  ;;  %v2542_v63 = vunpack.i.h.bf16 %v3890_v48 }
 0x19e   : > { %v2051_v15 = vsel %vm1404_vm1, %v2049_v4, %v2014_v45  ;;  %v2531_v0 = vunpack.i.l.bf16 %v3896_v22  ;;  %v2532_v21 = vunpack.i.h.bf16 %v3896_v22 }
 0x19f   : > { %v2059_v2 = vsel %vm803_vm0, %v2057_v44, %v2032_v62  ;;  %vm4055_vm0 = vcmask 343040  }
 0x1a0   : > { %v1946_v47 = vpop.permute.xlu1 %1945  ;;  %v2235_v39 = vpack.c.bf16 %v2059_v2, %v2051_v15  ;;  %v1592_v60 = vsel %vm4055_vm0, %v1591_v30, %v2486_v12  ;;  %vm4056_vm1 = vmmov %vm4055_vm0  ;;  %v1599_v43 = vsel %vm387_vm11, %v2531_v0, %v2536_v27  ;;  %v1800_v44 = vsel %vm387_vm11, %v2532_v21, %v2537_v50 }
 0x1a1   : > { %v1942_v34 = vpop.permute.xlu0 %1941  ;;  %v1793_v35 = vsel %vm4056_vm1, %v1792_v7, %v2487_v46  ;;  %v1593_v54 = vsel %vm375_vm5, %v1592_v60, %v2511_v28 }
 0x1a2   : > { %2236 = vmatprep.subr.bf16.mxu0 %v2235_v39  ;;  %v1794_v25 = vsel %vm375_vm5, %v1793_v35, %v2512_v38  ;;  %v1594_v13 = vsel %vm377_vm6, %v1593_v54, %v2526_v16  ;;  %v1992_v53 = vsel %vm369_vm2, %v3616_v1, %v1942_v34  ;;  %vm4057_vm2 = vmmov %vm4055_vm0 }
 0x1a3   : > { %2238 = vmatpush1.bf16.msra.mxu0 %v2237_v8  ;;  %v1795_v10 = vsel %vm377_vm6, %v1794_v25, %v2527_v61  ;;  %v1595_v42 = vsel %vm379_vm7, %v1594_v13, %v2541_v59  ;;  %v1993_v20 = vsel %vm371_vm3, %v1992_v53, %v1946_v47  ;;  %vm2060_vm3 = vcmask 1041408  }
 0x1a4   : > { %v3908_v29 = vpop.permute.xlu1 %2554  ;;  %v1796_v48 = vsel %vm379_vm7, %v1795_v10, %v2542_v63 }
 0x1a5   : > { %v2545_v31 = vpop.permute.xlu0 %2544  ;;  %v2556_v26 = vunpack.i.l.bf16 %v3908_v29  ;;  %v2557_v2 = vunpack.i.h.bf16 %v3908_v29 }
 0x1a6   : > { %v2546_v6 = vunpack.i.l.bf16 %v2545_v31  ;;  %v2547_v5 = vunpack.i.h.bf16 %v2545_v31 }
 0x1a8   : > { %v2560_v45 = vpop.permute.xlu1 %2559  ;;  %v1600_v1 = vsel %vm389_vm12, %v1599_v43, %v2546_v6  ;;  %v1801_v47 = vsel %vm389_vm12, %v1800_v44, %v2547_v5 }
 0x1a9   : > { %v2550_v36 = vpop.permute.xlu0 %2549  ;;  %v2561_v18 = vunpack.i.l.bf16 %v2560_v45  ;;  %v2562_v23 = vunpack.i.h.bf16 %v2560_v45  ;;  %v1601_v34 = vsel %vm391_vm14, %v1600_v1, %v2556_v26  ;;  %v1802_v17 = vsel %vm391_vm14, %v1801_v47, %v2557_v2 }
 0x1aa   : > { %v2551_v52 = vunpack.i.l.bf16 %v2550_v36  ;;  %v2552_v40 = vunpack.i.h.bf16 %v2550_v36 }
 0x1ac   : > { %v1954_v49 = vpop.permute.xlu1 %1953  ;;  %v1596_v58 = vsel %vm381_vm8, %v1595_v42, %v2551_v52  ;;  %v1797_v39 = vsel %vm381_vm8, %v1796_v48, %v2552_v40 }
 0x1ad   : > { %v1950_v57 = vpop.permute.xlu0 %1949  ;;  %v1597_v33 = vsel %vm383_vm9, %v1596_v58, %v2561_v18  ;;  %v1798_v36 = vsel %vm383_vm9, %v1797_v39, %v2562_v23 }
 0x1ae   : > { %v1994_v22 = vsel %vm4057_vm2, %v1993_v20, %v1950_v57  ;;  %v1598_v45 = vsel %vm385_vm10, %v1597_v33, %v2531_v0  ;;  %v1799_v28 = vsel %vm385_vm10, %v1798_v36, %v2532_v21 }
 0x1af   : > { %v1995_v19 = vsel %vm375_vm5, %v1994_v22, %v1954_v49  ;;  %v2037_v57 = vrot.slane %v1598_v45, 6  ;;  %v2043_v60 = vrot.slane %v1799_v28, 3  ;;  %vm2657_vm5 = vmmov 1  }
 0x1b0   : > { %v3926_v3 = vpop.permute.xlu1 %1973 }
 0x1b1   : > { %v2565_v32 = vpop.permute.xlu0 %2564  ;;  %v2061_v61 = vsel %vm2060_vm3, %v2031_v9, %v2037_v57 }
 0x1b2   : > { %v2566_v8 = vunpack.i.l.bf16 %v2565_v32  ;;  %v2567_v31 = vunpack.i.h.bf16 %v2565_v32  ;;  %v2064_v55 = vsel %vm2063_vm4, %v2061_v61, %v2043_v60 }
 0x1b4   : > { %v1962_v11 = vpop.permute.xlu1 %1961  ;;  %v1602_v56 = vsel %vm393_vm15, %v1601_v34, %v2566_v8  ;;  %v1803_v37 = vsel %vm393_vm15, %v1802_v17, %v2567_v31 }
 0x1b5   : > { %v1958_v24 = vpop.permute.xlu0 %1957  ;;  %v2038_v51 = vrot.slane %v1602_v56, 6  ;;  %v2044_v38 = vrot.slane %v1803_v37, 3 }
 0x1b6   : > { %v1996_v14 = vsel %vm377_vm6, %v1995_v19, %v1958_v24  ;;  %vm2240_vm6 = vmpackc.low %vm2047_vm13, %vm2657_vm5 }
 0x1b7   : > { %v1997_v49 = vsel %vm379_vm7, %v1996_v14, %v1962_v11  ;;  %v2062_v35 = vsel %vm2060_vm3, %v2032_v62, %v2038_v51  ;;  %vm2071_vm7 = vcmask 220160  }
 0x1b8   : > { %v1966_v15 = vpop.permute.xlu1 %1965  ;;  %v2065_v52 = vsel %vm2063_vm4, %v2062_v35, %v2044_v38 }
 0x1b9   : > { %v1978_v4 = vpop.permute.xlu0 %1977  ;;  %v1998_v7 = vsel %vm381_vm8, %v1997_v49, %v1966_v15  ;;  %vm2153_vm8 = vcmask 553984  }
 0x1ba   : > { %v2001_v16 = vsel %vm387_vm11, %v3926_v3, %v1978_v4 }
 0x1bc   : > { %v1970_v30 = vpop.permute.xlu1 %1969 }
 0x1bd   : > { %v1982_v29 = vpop.permute.xlu0 %1981  ;;  %v1999_v46 = vsel %vm383_vm9, %v1998_v7, %v1970_v30 }
 0x1be   : > { %v2002_v54 = vsel %vm389_vm12, %v2001_v16, %v1982_v29  ;;  %v2000_v32 = vsel %vm385_vm10, %v1999_v46, %v3926_v3 }
 0x1bf   : > { %v2242_v13 = vpack.c.bf16 %v2000_v32, %v2064_v55 }
 0x1c1   : > { %v1986_v12 = vpop.permute.xlu0 %1985 }
 0x1c2   : > { %v2003_v25 = vsel %vm391_vm14, %v2002_v54, %v1986_v12 }
 0x1c5   : > { %v1990_v59 = vpop.permute.xlu0 %1989 }
 0x1c6   : > { %v2004_v0 = vsel %vm393_vm15, %v2003_v25, %v1990_v59 }
 0x1c7   : > { %v2239_v62 = vpack.c.bf16 %v2004_v0, %v2065_v52 }
 0x1c9   : > { %2241 = vmatprep.subr.msk.bf16.mxu0 %vm2240_vm6, %v2239_v62 }
 0x1ca   : > { %2244 = vmatpush1.bf16.msk.msra.mxu0 %vm2240_vm6, %v2242_v13 }
 0x1cd   : > { %2231 = vmatmul.mubr.msk.f32.vlgmr.msra.gmra.mrb[0].mxu0 %vm2071_vm7, %v191_v41  ;;  %v2069_v9 = vpop.permute.xlu1 %2068 }
 0x2a0   : > { %v2147_v3 = vpop.f32.mrb[0].mxu0 }
 0x2a1   : > { %v2148_v6 = vadd.f32 %v2147_v3, %v2069_v9  ;;  %v2149_v11 = vpop.f32.mrb[1].mxu0 }
 0x2a2   : > { %v2150_v10 = vadd.f32 %v2149_v11, %v2069_v9 }
 0x2a3   : > { %2152 = vst [vmem:[%s190_s29] sm:$0x3f] %v2148_v6 }
 0x2a4   : > { %2154 = vst.msk [vmem:[%s190_s29 + $0x8] sm:$0x3f] %vm2153_vm8, %v2150_v10 }
 0x2a5 PF: > { %p13_p8 = scmp.ge.s32.totalorder %s2700_s17, 4   ;;  %s4058_s12 = smov %s2626_s13 }
 0x2a6   : > { %s4059_s13 = smov %s2630_s14  ;;  %s4060_s14 = smov %s2710_s20 }
 0x2a7   : > { %s4061_s15 = smov %s2700_s17  ;;  %15 = sbr.rel (!%p13_p8) target bundleno = 3 (0x3), region = 72 }
 0x2ae   :  { %2176 = vsyncpa [#allocation3], 1 }
 0x2af   :  { %2178 = vsyncpa [#allocation3 + $0x1], 1 }

</bundles_post_ra>
